<compile_context>
chip_gen: v7x
topology: tpu7x:2x2x1
jax: 0.10.0
libtpu: 0.0.40
codegen_flags: <defaults>
</compile_context>

<pallas_src>
import functools

import jax
import jax.numpy as jnp
from jax.experimental import pallas as pl
from jax.experimental.pallas import tpu as pltpu

LANES = 128
SUBLANES = 8


def autopad(k, p=None, d=1):
    """Pad to 'same' shape outputs (mirror of the PyTorch helper)."""
    if d > 1:
        k = d * (k - 1) + 1 if isinstance(k, int) else [d * (x - 1) + 1 for x in k]
    if p is None:
        p = k // 2 if isinstance(k, int) else [x // 2 for x in k]
    return p


def _round_up(n, m):
    return ((n + m - 1) // m) * m


def _vmem_capacity_bytes(default=64 << 20):
    """Physical VMEM per TensorCore; conservative 64 MiB (v7x) fallback."""
    try:
        info = pltpu.get_tpu_info()
        return int(getattr(info, "vmem_capacity_bytes", default))
    except Exception:
        return default


def _conv_bn_silu_kernel(x_ref, w_ref, b_ref, o_ref, big_ref, *,
                         TH, W8, KH, KW, C1, fold_kh):
    """One (batch, row-tile, c2-tile) grid step of conv(s=1) + folded BN + SiLU.

    x_ref  : (1, Hp, Wp, C1)                      bf16 padded image (reused across h/c2 steps)
    w_ref  : (KH*KW*C1, TC2) or (KH, KW*C1, TC2)  bf16 weights, BN scale folded in
    b_ref  : (1, TC2)                             f32 folded BN bias
    o_ref  : (1, TH, W8, TC2)                     bf16 output tile (lane dense)
    big_ref: VMEM im2col scratch, rebuilt only when the c2 index wraps to 0
    """
    THK = TH + KH - 1
    r0 = pl.multiple_of(pl.program_id(1) * TH, TH)

    @pl.when(pl.program_id(2) == 0)
    def _build_im2col():
        slab = x_ref[0, pl.ds(r0, THK), :, :]                  # (THK, Wp, C1) bf16
        if fold_kh:
            # big[r, w, (kh*KW+kw)*C1 + c] = slab[r+kh, w+kw, c]
            parts = [slab[kh:kh + TH, kw:kw + W8, :]
                     for kh in range(KH) for kw in range(KW)]
            big = parts[0] if len(parts) == 1 else jnp.concatenate(parts, axis=-1)
            big_ref[...] = big.reshape(TH * W8, KH * KW * C1)
        else:
            # big[r, w, kw*C1 + c] = slab[r, w+kw, c]
            parts = [slab[:, kw:kw + W8, :] for kw in range(KW)]
            big = parts[0] if len(parts) == 1 else jnp.concatenate(parts, axis=-1)
            big_ref[...] = big.reshape(THK * W8, KW * C1)

    if fold_kh:
        # Single MXU matmul, contraction KH*KW*C1 (small-C1 layers).
        acc = jnp.dot(big_ref[...], w_ref[...], preferred_element_type=jnp.float32)
    else:
        # KH matmuls with contraction KW*C1, f32 accumulation.
        acc = None
        for kh in range(KH):
            patch = big_ref[pl.ds(kh * W8, TH * W8), :]        # static, sublane-aligned slice
            t = jnp.dot(patch, w_ref[kh], preferred_element_type=jnp.float32)
            acc = t if acc is None else acc + t

    y = acc + b_ref[0]                                         # folded BN bias (f32)
    y = y * jax.nn.sigmoid(y)                                  # SiLU (f32)
    o_ref[0] = y.reshape(TH, W8, o_ref.shape[-1]).astype(o_ref.dtype)


def _vmem_estimate(TH, *, Hp, Wp, W8, C1, KH, KW, TC2, fold_kh):
    """Explicit per-step VMEM estimate: pipelined blocks + scratch + f32 temporaries."""
    thk = TH + KH - 1
    img = 2 * Hp * Wp * C1 * 2                     # double-buffered image block (bf16)
    wgt = 2 * KH * KW * C1 * TC2 * 2               # double-buffered weight block (bf16)
    bia = 2 * SUBLANES * TC2 * 4                   # bias block (f32, sublane padded)
    outb = 2 * TH * W8 * TC2 * 2                   # double-buffered output block (bf16)
    big = (TH * W8 * KH * KW * C1 * 2) if fold_kh else (thk * W8 * KW * C1 * 2)
    acc = TH * W8 * TC2 * 4                        # f32 accumulator
    tmp = 2 * acc + big                            # SiLU temporaries + im2col build copy
    return img + wgt + bia + outb + big + acc + tmp


def _pick_row_tile(Hout, max_th, fits):
    """Largest row tile TH dividing Hout (<= max_th) whose VMEM estimate fits the budget."""
    best = 1
    for th in range(1, max(1, max_th) + 1):
        if Hout % th == 0 and fits(th):
            best = th
    return best


@functools.partial(jax.jit, static_argnames=("k", "p", "s", "g", "d", "eps"))
def conv_bn_silu_nhwc(x_nhwc, weight, bn_gamma, bn_beta, bn_mean, bn_var,
                      *, k=1, p=None, s=1, g=1, d=1, eps=1e-5):
    """Fused Conv2d(bias=False) + BatchNorm2d(eval) + SiLU. NHWC in / NHWC (bf16) out.

    x_nhwc: (B, H, W, C1); weight: PyTorch layout (C2, C1, KH, KW).
    """
    # TODO(synk): stride > 1, groups > 1 and dilation > 1 are not implemented (the ASFF
    # Conv usages covered here are s=1, g=1, d=1); assert instead of silently being wrong.
    assert s == 1 and g == 1 and d == 1, "only stride=1, groups=1, dilation=1 supported"

    pad = autopad(k, p, d)
    B, H, W, C1 = x_nhwc.shape
    C2, C1w, KH, KW = weight.shape
    assert C1w == C1 and KH == k and KW == k

    Hout = H + 2 * pad - KH + 1
    Wout = W + 2 * pad - KW + 1
    W8 = _round_up(Wout, SUBLANES)                 # sublane-aligned output width
    Hp = H + 2 * pad
    Wp = max(W + 2 * pad, W8 + KW - 1)             # enough right padding for the W8 windows

    # Lane-dense output channels; 256-wide N tiles when possible (fills the 2x256 MXU
    # on v6e/v7x, still lane-dense and fine on v5e's 4x128 MXU).
    C2p = _round_up(C2, LANES)
    TC2 = 256 if (C2p % 256 == 0) else LANES
    n_c2 = C2p // TC2

    # Small-C1: fold KH into the contraction too so the systolic array depth isn't starved.
    fold_kh = (KW * C1) < LANES

    # ---- trace-time parameter prep (runs once inside the jit) -----------------
    scale = bn_gamma / jnp.sqrt(bn_var + eps)                  # (C2,)
    bias = bn_beta - bn_mean * scale                           # (C2,)
    w = jnp.transpose(weight, (2, 3, 1, 0)) * scale            # (KH, KW, C1, C2), BN folded
    w = jnp.pad(w, ((0, 0), (0, 0), (0, 0), (0, C2p - C2)))
    if fold_kh:
        w = w.reshape(KH * KW * C1, C2p).astype(jnp.bfloat16)
        w_spec = pl.BlockSpec((KH * KW * C1, TC2), lambda b, h, c: (0, c))
    else:
        w = w.reshape(KH, KW * C1, C2p).astype(jnp.bfloat16)
        w_spec = pl.BlockSpec((KH, KW * C1, TC2), lambda b, h, c: (0, 0, c))
    bias = jnp.pad(bias, (0, C2p - C2)).reshape(1, C2p).astype(jnp.float32)

    # Spatial "same" padding + bf16 cast for the MXU.
    # TODO(synk): keep activations bf16 NHWC end-to-end in the surrounding model (or use
    # allow_input_fusion) to avoid this pad/cast HBM round trip before the kernel.
    x = jnp.pad(x_nhwc, ((0, 0), (pad, Hp - H - pad), (pad, Wp - W - pad), (0, 0)))
    x = x.astype(jnp.bfloat16)

    # ---- row-tile selection against an explicit VMEM budget -------------------
    cap = _vmem_capacity_bytes()
    budget = int((cap - (8 << 20)) * 0.9)

    def fits(th):
        return _vmem_estimate(th, Hp=Hp, Wp=Wp, W8=W8, C1=C1, KH=KH, KW=KW,
                              TC2=TC2, fold_kh=fold_kh) <= budget

    max_th = Hout
    if B == 1 and n_c2 == 1 and Hout > 1:
        max_th = max(1, Hout // 2)                 # keep >=2 steps on a parallel axis (v7x: 2 TCs)
    TH = _pick_row_tile(Hout, max_th, fits)
    n_h = Hout // TH
    THK = TH + KH - 1

    big_shape = (TH * W8, KH * KW * C1) if fold_kh else (THK * W8, KW * C1)
    vmem_est = _vmem_estimate(TH, Hp=Hp, Wp=Wp, W8=W8, C1=C1, KH=KH, KW=KW,
                              TC2=TC2, fold_kh=fold_kh)
    vmem_limit = int(min(cap - (2 << 20), max(vmem_est + (8 << 20), 32 << 20)))

    kernel = functools.partial(_conv_bn_silu_kernel, TH=TH, W8=W8, KH=KH, KW=KW,
                               C1=C1, fold_kh=fold_kh)

    # TODO(synk): for very large feature maps on v7x (64 MiB VMEM), halo row-tile the image
    # block (or single-buffer it) instead of staging the whole padded image per batch.
    out = pl.pallas_call(
        kernel,
        out_shape=jax.ShapeDtypeStruct((B, Hout, W8, C2p), jnp.bfloat16),
        grid=(B, n_h, n_c2),   # c2 fastest: im2col scratch reused across all c2 tiles
        in_specs=[
            pl.BlockSpec((1, Hp, Wp, C1), lambda b, h, c: (b, 0, 0, 0)),
            w_spec,
            pl.BlockSpec((1, TC2), lambda b, h, c: (0, c)),
        ],
        out_specs=pl.BlockSpec((1, TH, W8, TC2), lambda b, h, c: (b, h, 0, c)),
        scratch_shapes=[pltpu.VMEM(big_shape, jnp.bfloat16)],
        compiler_params=pltpu.CompilerParams(
            # c2 axis carries the im2col-scratch reuse dependency -> "arbitrary".
            dimension_semantics=("parallel", "parallel", "arbitrary"),
            vmem_limit_bytes=vmem_limit,
        ),
    )(x, w, bias)

    return out[:, :, :Wout, :C2]


def conv_bn_silu(x_nchw, weight, bn_gamma, bn_beta, bn_mean, bn_var,
                 *, k=1, p=None, s=1, g=1, d=1, eps=1e-5):
    """NCHW adapter mirroring the PyTorch module. In a full ASFF head keep tensors NHWC
    end-to-end and call conv_bn_silu_nhwc directly (saves 2 transposes)."""
    x = jnp.transpose(x_nchw, (0, 2, 3, 1))
    y = conv_bn_silu_nhwc(x, weight, bn_gamma, bn_beta, bn_mean, bn_var,
                          k=k, p=p, s=s, g=g, d=d, eps=eps)
    return jnp.transpose(y, (0, 3, 1, 2))


# ------------------------------ references -----------------------------------
def _reference_f32(x_nchw, weight, g_, b_, m_, v_, *, k=1, p=None, d=1, eps=1e-5):
    """Faithful f32 conv + BN + SiLU (PyTorch-equivalent forward)."""
    pad = autopad(k, p, d)
    y = jax.lax.conv_general_dilated(
        x_nchw, weight, window_strides=(1, 1),
        padding=[(pad, pad), (pad, pad)],
        dimension_numbers=("NCHW", "OIHW", "NCHW"))
    scale = (g_ / jnp.sqrt(v_ + eps)).reshape(1, -1, 1, 1)
    bias = (b_ - m_ * g_ / jnp.sqrt(v_ + eps)).reshape(1, -1, 1, 1)
    y = y * scale + bias
    return y * jax.nn.sigmoid(y)


def _reference_bf16(x_nchw, weight, g_, b_, m_, v_, *, k=1, p=None, d=1, eps=1e-5):
    """Matches the kernel's numerics: BN scale folded into bf16 weights, f32 accumulation."""
    pad = autopad(k, p, d)
    scale = g_ / jnp.sqrt(v_ + eps)
    bias = (b_ - m_ * scale).reshape(1, -1, 1, 1)
    w = (weight * scale.reshape(-1, 1, 1, 1)).astype(jnp.bfloat16)
    y = jax.lax.conv_general_dilated(
        x_nchw.astype(jnp.bfloat16), w, window_strides=(1, 1),
        padding=[(pad, pad), (pad, pad)],
        dimension_numbers=("NCHW", "OIHW", "NCHW"),
        preferred_element_type=jnp.float32)
    y = y + bias
    return y * jax.nn.sigmoid(y)


if __name__ == "__main__":
    key = jax.random.PRNGKey(0)
    k_x, k_w, k_g, k_b, k_m, k_v = jax.random.split(key, 6)

    # Small shapes: Conv(c1=4, c2=8, k=3, s=1) on a (2, 4, 16, 16) input.
    B, C1, C2, H, W, K = 2, 4, 8, 16, 16, 3

    x = jax.random.normal(k_x, (B, C1, H, W), dtype=jnp.float32)
    weight = jax.random.normal(k_w, (C2, C1, K, K), dtype=jnp.float32) * 0.1
    bn_gamma = 1.0 + 0.1 * jax.random.normal(k_g, (C2,), dtype=jnp.float32)
    bn_beta = 0.1 * jax.random.normal(k_b, (C2,), dtype=jnp.float32)
    bn_mean = 0.1 * jax.random.normal(k_m, (C2,), dtype=jnp.float32)
    bn_var = jnp.abs(1.0 + 0.1 * jax.random.normal(k_v, (C2,), dtype=jnp.float32))

    out = conv_bn_silu(x, weight, bn_gamma, bn_beta, bn_mean, bn_var, k=K)
    out = jax.block_until_ready(out)
    assert out.shape == (B, C2, H, W), out.shape
    out_f32 = out.astype(jnp.float32)

    # Tight check vs a reference using the same bf16-input / f32-accumulate numerics
    # (kernel additionally stores the result in bf16).
    ref16 = _reference_bf16(x, weight, bn_gamma, bn_beta, bn_mean, bn_var, k=K)
    err16 = float(jnp.max(jnp.abs(out_f32 - ref16)))
    assert err16 < 2.5e-2, err16

    # Loose check vs the faithful f32 forward of the PyTorch module.
    ref32 = _reference_f32(x, weight, bn_gamma, bn_beta, bn_mean, bn_var, k=K)
    err32 = float(jnp.max(jnp.abs(out_f32 - ref32)))
    assert err32 < 6e-2, err32

    print("KERNEL_OK")
</pallas_src>

<mosaic_0001>
module attributes {stable_mosaic.version = 11 : i64} {
  func.func @_conv_bn_silu_kernel(%arg0: i32, %arg1: i32, %arg2: i32, %arg3: memref<1x18x18x4xbf16, #tpu.memory_space<vmem>>, %arg4: memref<36x128xbf16, #tpu.memory_space<vmem>>, %arg5: memref<1x128xf32, #tpu.memory_space<vmem>>, %arg6: memref<1x16x16x128xbf16, #tpu.memory_space<vmem>>, %arg7: memref<256x36xbf16, #tpu.memory_space<vmem>>) attributes {dimension_semantics = [#tpu.dimension_semantics<parallel>, #tpu.dimension_semantics<parallel>, #tpu.dimension_semantics<arbitrary>], iteration_bounds = array<i64: 2, 1, 1>, scalar_prefetch = 0 : i64, scratch_operands = 1 : i64, tpu.core_type = #tpu.core_type<tc>, window_params = [{transform_indices = @transform_0, window_bounds = array<i64: 1, 18, 18, 4>}, {transform_indices = @transform_1, window_bounds = array<i64: 36, 128>}, {transform_indices = @transform_2, window_bounds = array<i64: 1, 128>}, {transform_indices = @transform_3, window_bounds = array<i64: 1, 16, 16, 128>}]} {
    %c16_i32 = arith.constant 16 : i32
    %0 = arith.muli %arg1, %c16_i32 : i32
    %1 = tpu.assume_multiple %0, 16 : i32
    %c0_i32 = arith.constant 0 : i32
    %2 = arith.cmpi eq, %arg2, %c0_i32 : i32
    %3 = arith.extui %2 : i1 to i32
    %c0_i32_0 = arith.constant 0 : i32
    %4 = arith.cmpi ne, %3, %c0_i32_0 : i32
    scf.if %4 {
      %c0_11 = arith.constant 0 : index
      %24 = arith.index_cast %1 : i32 to index
      %c0_12 = arith.constant 0 : index
      %c0_13 = arith.constant 0 : index
      %25 = vector.load %arg3[%c0_11, %24, %c0_12, %c0_13] : memref<1x18x18x4xbf16, #tpu.memory_space<vmem>>, vector<1x18x18x4xbf16>
      %26 = vector.shape_cast %25 : vector<1x18x18x4xbf16> to vector<18x18x4xbf16>
      %27 = vector.extract_strided_slice %26 {offsets = [0, 0, 0], sizes = [16, 16, 4], strides = [1, 1, 1]} : vector<18x18x4xbf16> to vector<16x16x4xbf16>
      %28 = vector.extract_strided_slice %26 {offsets = [0, 1, 0], sizes = [16, 16, 4], strides = [1, 1, 1]} : vector<18x18x4xbf16> to vector<16x16x4xbf16>
      %29 = vector.extract_strided_slice %26 {offsets = [0, 2, 0], sizes = [16, 16, 4], strides = [1, 1, 1]} : vector<18x18x4xbf16> to vector<16x16x4xbf16>
      %30 = vector.extract_strided_slice %26 {offsets = [1, 0, 0], sizes = [16, 16, 4], strides = [1, 1, 1]} : vector<18x18x4xbf16> to vector<16x16x4xbf16>
      %31 = vector.extract_strided_slice %26 {offsets = [1, 1, 0], sizes = [16, 16, 4], strides = [1, 1, 1]} : vector<18x18x4xbf16> to vector<16x16x4xbf16>
      %32 = vector.extract_strided_slice %26 {offsets = [1, 2, 0], sizes = [16, 16, 4], strides = [1, 1, 1]} : vector<18x18x4xbf16> to vector<16x16x4xbf16>
      %33 = vector.extract_strided_slice %26 {offsets = [2, 0, 0], sizes = [16, 16, 4], strides = [1, 1, 1]} : vector<18x18x4xbf16> to vector<16x16x4xbf16>
      %34 = vector.extract_strided_slice %26 {offsets = [2, 1, 0], sizes = [16, 16, 4], strides = [1, 1, 1]} : vector<18x18x4xbf16> to vector<16x16x4xbf16>
      %35 = vector.extract_strided_slice %26 {offsets = [2, 2, 0], sizes = [16, 16, 4], strides = [1, 1, 1]} : vector<18x18x4xbf16> to vector<16x16x4xbf16>
      %36 = tpu.concatenate %27, %28, %29, %30, %31, %32, %33, %34, %35 in 2 : vector<16x16x4xbf16>, vector<16x16x4xbf16>, vector<16x16x4xbf16>, vector<16x16x4xbf16>, vector<16x16x4xbf16>, vector<16x16x4xbf16>, vector<16x16x4xbf16>, vector<16x16x4xbf16>, vector<16x16x4xbf16> -> vector<16x16x36xbf16>
      %37 = vector.shape_cast %36 : vector<16x16x36xbf16> to vector<256x36xbf16>
      %c0_14 = arith.constant 0 : index
      %c0_15 = arith.constant 0 : index
      %38 = vector.load %arg7[%c0_14, %c0_15] : memref<256x36xbf16, #tpu.memory_space<vmem>>, vector<256x36xbf16>
      tpu.vector_store %arg7[%c0_14, %c0_15], %37 {strides = array<i32>} : memref<256x36xbf16, #tpu.memory_space<vmem>>, vector<256x36xbf16>,
    } else {
    }
    %c0 = arith.constant 0 : index
    %c0_1 = arith.constant 0 : index
    %5 = vector.load %arg7[%c0, %c0_1] : memref<256x36xbf16, #tpu.memory_space<vmem>>, vector<256x36xbf16>
    %c0_2 = arith.constant 0 : index
    %c0_3 = arith.constant 0 : index
    %6 = vector.load %arg4[%c0_2, %c0_3] : memref<36x128xbf16, #tpu.memory_space<vmem>>, vector<36x128xbf16>
    %cst = arith.constant dense<0.000000e+00> : vector<256x128xf32>
    %7 = tpu.matmul %5, %6, %cst {dimension_numbers = #tpu.dot_dimension_numbers<[1], [0], [0], [1], [0, 0, 1, 1], [], []>} : vector<256x36xbf16>, vector<36x128xbf16>, vector<256x128xf32> -> vector<256x128xf32>
    %c0_4 = arith.constant 0 : index
    %c0_5 = arith.constant 0 : index
    %8 = vector.load %arg5[%c0_4, %c0_5] : memref<1x128xf32, #tpu.memory_space<vmem>>, vector<1x128xf32>
    %9 = vector.shape_cast %8 : vector<1x128xf32> to vector<128xf32>
    %10 = vector.shape_cast %9 : vector<128xf32> to vector<1x128xf32>
    %11 = vector.broadcast %10 : vector<1x128xf32> to vector<256x128xf32>
    %12 = arith.addf %7, %11 : vector<256x128xf32>
    %13 = arith.negf %12 : vector<256x128xf32>
    %14 = math.exp %13 : vector<256x128xf32>
    %cst_6 = arith.constant 1.000000e+00 : f32
    %15 = vector.broadcast %cst_6 : f32 to vector<256x128xf32>
    %16 = arith.addf %15, %14 : vector<256x128xf32>
    %17 = arith.divf %15, %16 : vector<256x128xf32>
    %18 = arith.mulf %12, %17 : vector<256x128xf32>
    %19 = vector.shape_cast %18 : vector<256x128xf32> to vector<16x16x128xf32>
    %20 = arith.truncf %19 : vector<16x16x128xf32> to vector<16x16x128xbf16>
    %c0_7 = arith.constant 0 : index
    %c0_8 = arith.constant 0 : index
    %c0_9 = arith.constant 0 : index
    %c0_10 = arith.constant 0 : index
    %21 = vector.load %arg6[%c0_7, %c0_8, %c0_9, %c0_10] : memref<1x16x16x128xbf16, #tpu.memory_space<vmem>>, vector<1x16x16x128xbf16>
    %22 = vector.shape_cast %21 : vector<1x16x16x128xbf16> to vector<16x16x128xbf16>
    %23 = vector.shape_cast %20 : vector<16x16x128xbf16> to vector<1x16x16x128xbf16>
    tpu.vector_store %arg6[%c0_7, %c0_8, %c0_9, %c0_10], %23 {strides = array<i32>} : memref<1x16x16x128xbf16, #tpu.memory_space<vmem>>, vector<1x16x16x128xbf16>,
    return
  }
  func.func @transform_0(%arg0: i32, %arg1: i32, %arg2: i32) -> (i32, i32, i32, i32) {
    %c0_i32 = arith.constant 0 : i32
    %c0_i32_0 = arith.constant 0 : i32
    %c0_i32_1 = arith.constant 0 : i32
    %c0_i32_2 = arith.constant 0 : i32
    return %arg0, %c0_i32, %c0_i32_0, %c0_i32_1 : i32, i32, i32, i32
  }
  func.func @transform_1(%arg0: i32, %arg1: i32, %arg2: i32) -> (i32, i32) {
    %c0_i32 = arith.constant 0 : i32
    %c0_i32_0 = arith.constant 0 : i32
    return %c0_i32, %arg2 : i32, i32
  }
  func.func @transform_2(%arg0: i32, %arg1: i32, %arg2: i32) -> (i32, i32) {
    %c0_i32 = arith.constant 0 : i32
    %c0_i32_0 = arith.constant 0 : i32
    return %c0_i32, %arg2 : i32, i32
  }
  func.func @transform_3(%arg0: i32, %arg1: i32, %arg2: i32) -> (i32, i32, i32, i32) {
    %c0_i32 = arith.constant 0 : i32
    %c0_i32_0 = arith.constant 0 : i32
    return %arg0, %arg1, %c0_i32, %arg2 : i32, i32, i32, i32
  }
}

</mosaic_0001>

<bundles_post_ra>
// kernel: conv_bn_silu_nhwc.1
= control target key start
LH: loop header
LB: loop body
LE: loop exit
PB: predicated region body
PF: predicated region fallthrough
CT: control target
= control target key end

     0   :  { %s2623_s12 = smov 0   ;;  %s2625_s13 = smov 0   ;;  %s3441_s0 = inlined_call_operand.vmem [shape: bf16[2,18,18,4], index: 0, kind: input, shape index: {}]   ;;  %s3442_s1 = inlined_call_operand.vmem [shape: bf16[36,128], index: 1, kind: input, shape index: {}]   ;;  %s3443_s2 = inlined_call_operand.vmem [shape: f32[1,128], index: 2, kind: input, shape index: {}]   ;;  %s3444_s3 = inlined_call_operand.vmem [shape: bf16[2,16,16,128], index: 3, kind: output, shape index: {}]  }
   0x1   :  { %s2627_s14 = smov 0  }
   0x2 LB: > { %s32_s15 = sadd.s32 1, %s2589_s13  ;;  %p2050_p0 = scmp.ge.s32.totalorder %s2593_s14, 1  ;;  %s2593_s14 = sphi %s2627_s14, %s13_s14   ;;  %s2589_s13 = sphi %s2625_s13, %s3446_s13   ;;  %s2585_s12 = sphi %s2623_s12, %s3445_s12  }
   0x3   : > { %p34_p1 = scmp.ge.s32.totalorder %s32_s15, 2  ;;  %p177_p2 = scmp.lt.s32.totalorder %s2593_s14, 3 }
   0x5   : > { %s3448_s15 = smov (%p34_p1, %s32_s15), 0  ;;  %p178_p3 = pnand %p2050_p0, %p177_p2 }
   0x6   : > { %p216_p4 = scmp.lt.s32.totalorder (!%p178_p3), %s2585_s12, 1  ;;  %vm658_vm0 = vcmask (!%p178_p3), 1046528   ;;  %s2595_s20 = smov (!%p178_p3), 12   ;;  %vm433_vm1 = vsmask.f32 (!%p178_p3), 7424  ;;  %vm1366_vm2 = vcmask (!%p178_p3), 1041408  }
   0x7   : > { %181 = sbr.rel (%p178_p3) target bundleno = 647 (0x287), region = 32  ;;  %s2596_s21 = smov (!%p178_p3), 8   ;;  %vm977_vm3 = vcmask (!%p178_p3), 31744   ;;  %vm1010_vm4 = vcmask (!%p178_p3), 64512   ;;  %vm1076_vm5 = vcmask (!%p178_p3), 130048   ;;  %vm1043_vm6 = vcmask (!%p178_p3), 97280  }
   0x8   : > { %s2597_s22 = smov (!%p178_p3), 4   ;;  %s2598_s23 = smov (!%p178_p3), 16   ;;  %vm1109_vm7 = vcmask (!%p178_p3), 162816   ;;  %vm1142_vm8 = vcmask (!%p178_p3), 195584   ;;  %vm1175_vm9 = vcmask (!%p178_p3), 228352   ;;  %vm1208_vm10 = vcmask (!%p178_p3), 261120  }
   0x9   : > { %s2599_s24 = smov (!%p178_p3), 20   ;;  %s2600_s25 = smov (!%p178_p3), 24   ;;  %vm1257_vm11 = vcmask (!%p178_p3), 293888  }
   0xa   : > { %s2601_s26 = smov (!%p178_p3), 28   ;;  %s2602_s4 = smov (!%p178_p3), 32  }
   0xe   : > { %s3450_s12 = smov (!%p216_p4, %s2585_s12), 1 }
   0xf   : > { %s2369_s16 = smul.u32 216, %s3450_s12  ;;  %s2176_s9 = sshll.u32 %s3450_s12, 7 }
  0x11   : > { %s2647_s19 = scalar_lea.vmem %s3441_s0, %s2369_s16  ;;  %s3365_s16 = scalar_lea.vmem %s3444_s3, %s2176_s9 }
  0x12   : > { %v2650_v0 = vld [vmem:[%s2647_s19 + $0x6c] sm:$0xff]   ;;  %v2660_v2 = vld [vmem:[%s2647_s19 + $0x60] sm:$0xff]   ;;  %v2405_v3 = vld [vmem:[%s2647_s19 + $0x68] ss:$0 sps:$4 sm:$0x11]  }
  0x13   : > { %v2653_v1 = vld [vmem:[%s2647_s19 + $0xc] sm:$0xff]   ;;  %760 = vrot.lane.b32.xlu1 %v2650_v0, %s2595_s20  ;;  %v2664_v4 = vld [vmem:[%s2647_s19] sm:$0xff]   ;;  %v686_v5 = vrot.slane %v2650_v0, 1  ;;  %v683_v6 = vrot.slane %v2660_v2, 1  ;;  %v684_v7 = vrot.slane %v2405_v3, 1  ;;  %v543_v26 = vshrl.u32 %v2650_v0, 16 }
  0x14   : > { %744 = vrot.lane.b32.xlu0 %v2653_v1, %s2595_s20  ;;  %v2407_v8 = vld [vmem:[%s2647_s19 + $0x8] ss:$0 sps:$4 sm:$0x11]   ;;  %v662_v9 = vrot.slane %v2653_v1, 1  ;;  %v659_v10 = vrot.slane %v2664_v4, 1  ;;  %v447_v16 = vshrl.u32 %v2653_v1, 16 }
  0x15   : > { %v2408_v11 = vld [vmem:[%s2647_s19 + $0x74] ss:$0 sps:$4 sm:$0x11]   ;;  %v2673_v12 = vsel %vm658_vm0, %v683_v6, %v684_v7  ;;  %v660_v13 = vrot.slane %v2407_v8, 1  ;;  %v449_v17 = vshll.u32 %v2653_v1, 16  ;;  %v435_v18 = vshrl.u32 %v2664_v4, 16 }
  0x16   : > { %v2409_v14 = vld [vmem:[%s2647_s19 + $0x14] ss:$0 sps:$4 sm:$0x11]   ;;  %v687_v15 = vrot.slane %v2408_v11, 1  ;;  %v437_v22 = vshll.u32 %v2664_v4, 16  ;;  %v442_v25 = vshll.u32 %v2407_v8, 16 }
  0x17   : > { %723 = vrot.lane.b32.xlu1 %v2673_v12, %s2596_s21  ;;  %v661_v19 = vsel %vm658_vm0, %v659_v10, %v660_v13  ;;  %v663_v20 = vrot.slane %v2409_v14, 1  ;;  %v454_v21 = vshll.u32 %v2409_v14, 16  ;;  %v451_v24 = vrot.slane %v449_v17, 1  ;;  %v2695_v39 = vld [vmem:[%s2647_s19 + $0x78] sm:$0xff]   ;;  %v2741_v10 = vld [vmem:[%s2647_s19 + $0x84] sm:$0xff]  }
  0x18   : > { %707 = vrot.lane.b32.xlu0 %v661_v19, %s2596_s21  ;;  %v2685_v23 = vsel %vm658_vm0, %v686_v5, %v687_v15  ;;  %v439_v29 = vrot.slane %v437_v22, 1  ;;  %v545_v30 = vshll.u32 %v2650_v0, 16  ;;  %v444_v32 = vrot.slane %v442_v25, 1  ;;  %v2701_v46 = vld [vmem:[%s2647_s19 + $0x18] sm:$0xff]   ;;  %v2750_v13 = vld [vmem:[%s2647_s19 + $0x24] sm:$0xff]  }
  0x19   : > { %v664_v27 = vsel %vm658_vm0, %v662_v9, %v663_v20  ;;  %v456_v28 = vrot.slane %v454_v21, 1  ;;  %v452_v31 = vor.u32 %v451_v24, %v447_v16  ;;  %v550_v33 = vshll.u32 %v2408_v11, 16  ;;  %v2412_v47 = vld [vmem:[%s2647_s19 + $0x80] ss:$0 sps:$4 sm:$0x11]  }
  0x1a   : > { %v531_v34 = vshrl.u32 %v2660_v2, 16  ;;  %v440_v35 = vor.u32 %v439_v29, %v435_v18  ;;  %v547_v36 = vrot.slane %v545_v30, 1  ;;  %v533_v37 = vshll.u32 %v2660_v2, 16  ;;  %v2413_v52 = vld [vmem:[%s2647_s19 + $0x20] ss:$0 sps:$4 sm:$0x11]  }
  0x1b   : > { %725 = vrot.lane.b32.xlu1 %v2685_v23, %s2596_s21  ;;  %v538_v38 = vshll.u32 %v2405_v3, 16  ;;  %v457_v40 = vsel %vm433_vm1, %v452_v31, %v456_v28  ;;  %v552_v41 = vrot.slane %v550_v33, 1  ;;  %v557_v50 = vshll.u32 %v2695_v39, 16  ;;  %v2416_v15 = vld [vmem:[%s2647_s19 + $0x8c] ss:$0 sps:$4 sm:$0x11]  }
  0x1c   : > { %709 = vrot.lane.b32.xlu0 %v664_v27, %s2596_s21  ;;  %v445_v42 = vsel %vm433_vm1, %v440_v35, %v444_v32  ;;  %v548_v43 = vor.u32 %v547_v36, %v543_v26  ;;  %v535_v44 = vrot.slane %v533_v37, 1  ;;  %v461_v53 = vshll.u32 %v2701_v46, 16  ;;  %v2417_v18 = vld [vmem:[%s2647_s19 + $0x2c] ss:$0 sps:$4 sm:$0x11]   ;;  %v2432_v30 = vld [vmem:[%s3442_s1] sm:$0xff]  }
  0x1d   : > { %v540_v45 = vrot.slane %v538_v38, 1  ;;  %v555_v54 = vshrl.u32 %v2695_v39, 16  ;;  %v559_v55 = vrot.slane %v557_v50, 1  ;;  %v562_v56 = vshll.u32 %v2412_v47, 16  ;;  %2323 = vmatprep.subr.bf16.mxu0 %v2432_v30  ;;  %2361 = vmatprep.subr.bf16.mxu1 %v2432_v30  ;;  %v2433_v33 = vld [vmem:[%s3442_s1 + $0x8] sm:$0xff]  }
  0x1e   : > { %v2706_v48 = vsel %vm433_vm1, %v548_v43, %v552_v41  ;;  %v536_v49 = vor.u32 %v535_v44, %v531_v34  ;;  %v459_v57 = vshrl.u32 %v2701_v46, 16  ;;  %v463_v58 = vrot.slane %v461_v53, 1  ;;  %2324 = vmatpush3.bf16.msra.mxu0 %v2432_v30  ;;  %2364 = vmatpush3.bf16.msra.mxu1 %v2432_v30  ;;  %v2436_v34 = vld [vmem:[%s3442_s1 + $0x10] ss:$0 sps:$4 sm:$0x33]  }
  0x1f   : > { %628 = vrot.lane.b32.xlu1 %v457_v40, %s2597_s22  ;;  %v466_v59 = vshll.u32 %v2413_v52, 16  ;;  %v560_v60 = vor.u32 %v559_v55, %v555_v54  ;;  %v564_v61 = vrot.slane %v562_v56, 1  ;;  %v689_v6 = vrot.slane %v2695_v39, 1  ;;  %2325 = vmatprep.subr.bf16.mxu0 %v2433_v33  ;;  %v2805_v43 = vld [vmem:[%s2647_s19 + $0x90] sm:$0xff]  }
  0x20   : > { %626 = vrot.lane.b32.xlu0 %v445_v42, %s2597_s22  ;;  %v2711_v51 = vsel %vm433_vm1, %v536_v49, %v540_v45  ;;  %v464_v62 = vor.u32 %v463_v58, %v459_v57  ;;  %v690_v7 = vrot.slane %v2412_v47, 1  ;;  %v665_v8 = vrot.slane %v2701_v46, 1  ;;  %2362 = vmatprep.subr.bf16.mxu1 %v2433_v33  ;;  %v2809_v44 = vld [vmem:[%s2647_s19 + $0x30] sm:$0xff]   ;;  %v2420_v45 = vld [vmem:[%s2647_s19 + $0x98] ss:$0 sps:$4 sm:$0x11]  }
  0x21   : > { %v468_v63 = vrot.slane %v466_v59, 1  ;;  %v2728_v3 = vsel %vm433_vm1, %v560_v60, %v564_v61  ;;  %v666_v9 = vrot.slane %v2413_v52, 1  ;;  %v569_v16 = vshll.u32 %v2741_v10, 16  ;;  %v2421_v49 = vld [vmem:[%s2647_s19 + $0x38] ss:$0 sps:$4 sm:$0x11]  }
  0x22   : > { %v2746_v11 = vsel %vm658_vm0, %v689_v6, %v690_v7  ;;  %v567_v17 = vshrl.u32 %v2741_v10, 16  ;;  %v473_v19 = vshll.u32 %v2750_v13, 16  ;;  %v574_v21 = vshll.u32 %v2416_v15, 16  ;;  %2326 = vmatpush3.bf16.msra.mxu0 %v2433_v33  ;;  %2365 = vmatpush3.bf16.msra.mxu1 %v2433_v33 }
  0x23   : > { %644 = vrot.lane.b32.xlu1 %v2706_v48, %s2597_s22  ;;  %v2732_v5 = vsel %vm433_vm1, %v464_v62, %v468_v63  ;;  %v667_v14 = vsel %vm658_vm0, %v665_v8, %v666_v9  ;;  %v571_v20 = vrot.slane %v569_v16, 1  ;;  %v471_v22 = vshrl.u32 %v2750_v13, 16  ;;  %2367 = vmatprep.subr.msk.bf16.mxu0 %vm1366_vm2, %v2436_v34  ;;  %v2838_v9 = vld [vmem:[%s2647_s19 + $0x9c] sm:$0xff]  }
  0x24   : > { %642 = vrot.lane.b32.xlu0 %v2711_v51, %s2597_s22  ;;  %v475_v24 = vrot.slane %v473_v19, 1  ;;  %v478_v25 = vshll.u32 %v2417_v18, 16  ;;  %v692_v35 = vrot.slane %v2741_v10, 1  ;;  %v693_v36 = vrot.slane %v2416_v15, 1  ;;  %2368 = vmatprep.subr.msk.bf16.mxu1 %vm1366_vm2, %v2436_v34 }
  0x25   : > { %v572_v26 = vor.u32 %v571_v20, %v567_v17  ;;  %v1368_v37 = vsel %vm1366_vm2, %v2436_v34, 0  ;;  %v668_v38 = vrot.slane %v2750_v13, 1  ;;  %v581_v47 = vshll.u32 %v2805_v43, 16  ;;  %v2424_v15 = vld [vmem:[%s2647_s19 + $0xa4] ss:$0 sps:$4 sm:$0x11]  }
  0x26   : > { %v476_v28 = vor.u32 %v475_v24, %v471_v22  ;;  %v480_v29 = vrot.slane %v478_v25, 1  ;;  %2328 = vmatpush3.bf16.msra.mxu0 %v1368_v37  ;;  %2366 = vmatpush3.bf16.msra.mxu1 %v1368_v37  ;;  %v694_v41 = vsel %vm658_vm0, %v692_v35, %v693_v36  ;;  %v485_v50 = vshll.u32 %v2809_v44, 16  ;;  %v2425_v17 = vld [vmem:[%s2647_s19 + $0x44] ss:$0 sps:$4 sm:$0x11]  }
  0x27   : > { %762 = vrot.lane.b32.xlu1 %v2695_v39, %s2595_s20  ;;  %v579_v52 = vshrl.u32 %v2805_v43, 16  ;;  %v583_v53 = vrot.slane %v581_v47, 1  ;;  %v586_v54 = vshll.u32 %v2420_v45, 16  ;;  %v483_v55 = vshrl.u32 %v2809_v44, 16 }
  0x28   : > { %746 = vrot.lane.b32.xlu0 %v2701_v46, %s2595_s20  ;;  %v481_v32 = vsel %vm433_vm1, %v476_v28, %v480_v29  ;;  %v487_v56 = vrot.slane %v485_v50, 1  ;;  %v490_v57 = vshll.u32 %v2421_v49, 16  ;;  %v671_v6 = vrot.slane %v2809_v44, 1 }
  0x29   : > { %v584_v58 = vor.u32 %v583_v53, %v579_v52  ;;  %v588_v59 = vrot.slane %v586_v54, 1  ;;  %v672_v7 = vrot.slane %v2421_v49, 1  ;;  %v593_v16 = vshll.u32 %v2838_v9, 16 }
  0x2a   : > { %v488_v60 = vor.u32 %v487_v56, %v483_v55  ;;  %v492_v61 = vrot.slane %v490_v57, 1  ;;  %v591_v19 = vshrl.u32 %v2838_v9, 16  ;;  %v502_v25 = vshll.u32 %v2425_v17, 16  ;;  %v2904_v56 = vld [vmem:[%s2647_s19 + $0xa8] sm:$0xff]  }
  0x2b   : > { %807 = vrot.lane.b32.xlu1 %v2706_v48, %s2598_s23  ;;  %v589_v62 = vsel %vm433_vm1, %v584_v58, %v588_v59  ;;  %v595_v20 = vrot.slane %v593_v16, 1  ;;  %v698_v36 = vrot.slane %v2838_v9, 1  ;;  %v699_v37 = vrot.slane %v2424_v15, 1  ;;  %v2910_v58 = vld [vmem:[%s2647_s19 + $0x48] sm:$0xff]  }
  0x2c   : > { %791 = vrot.lane.b32.xlu0 %v457_v40, %s2598_s23  ;;  %v669_v40 = vrot.slane %v2417_v18, 1  ;;  %v493_v63 = vsel %vm433_vm1, %v488_v60, %v492_v61  ;;  %v504_v29 = vrot.slane %v502_v25, 1  ;;  %v2428_v60 = vld [vmem:[%s2647_s19 + $0xb0] ss:$0 sps:$4 sm:$0x11]   ;;  %v605_v61 = vshll.u32 %v2904_v56, 16 }
  0x2e   : > { %v670_v42 = vsel %vm658_vm0, %v668_v38, %v669_v40 }
  0x2f   : > { %809 = vrot.lane.b32.xlu1 %v2728_v3, %s2598_s23 }
  0x30   : > { %793 = vrot.lane.b32.xlu0 %v2732_v5, %s2598_s23 }
  0x33   : > { %842 = vrot.lane.b32.xlu1 %v2685_v23, %s2599_s24 }
  0x34   : > { %826 = vrot.lane.b32.xlu0 %v664_v27, %s2599_s24  ;;  %v576_v27 = vrot.slane %v574_v21, 1  ;;  %v598_v21 = vshll.u32 %v2424_v15, 16  ;;  %v507_v15 = vshrl.u32 %v2910_v58, 16 }
  0x36   : > { %v577_v31 = vsel %vm433_vm1, %v572_v26, %v576_v27  ;;  %v596_v26 = vor.u32 %v595_v20, %v591_v19  ;;  %v600_v27 = vrot.slane %v598_v21, 1 }
  0x37   : > { %844 = vrot.lane.b32.xlu1 %v2746_v11, %s2599_s24 }
  0x38   : > { %828 = vrot.lane.b32.xlu0 %v667_v14, %s2599_s24 }
  0x3b   : > { %879 = vrot.lane.b32.xlu1 %v2695_v39, %s2600_s25 }
  0x3c   : > { %863 = vrot.lane.b32.xlu0 %v2701_v46, %s2600_s25 }
  0x3f   : > { %881 = vrot.lane.b32.xlu1 %v2741_v10, %s2600_s25 }
  0x40   : > { %865 = vrot.lane.b32.xlu0 %v2750_v13, %s2600_s25 }
  0x43   : > { %926 = vrot.lane.b32.xlu1 %v2728_v3, %s2601_s26 }
  0x44   : > { %910 = vrot.lane.b32.xlu0 %v2732_v5, %s2601_s26 }
  0x47   : > { %928 = vrot.lane.b32.xlu1 %v577_v31, %s2601_s26 }
  0x48   : > { %912 = vrot.lane.b32.xlu0 %v481_v32, %s2601_s26 }
  0x4b   : > { %961 = vrot.lane.b32.xlu1 %v2746_v11, %s2602_s4 }
  0x4c   : > { %945 = vrot.lane.b32.xlu0 %v667_v14, %s2602_s4 }
  0x4f   : > { %646 = vrot.lane.b32.xlu1 %v2728_v3, %s2597_s22  ;;  %v695_v3 = vrot.slane %v2805_v43, 1 }
  0x50   : > { %630 = vrot.lane.b32.xlu0 %v2732_v5, %s2597_s22  ;;  %v696_v5 = vrot.slane %v2420_v45, 1  ;;  %v700_v45 = vsel %vm658_vm0, %v698_v36, %v699_v37  ;;  %v701_v36 = vrot.slane %v2904_v56, 1  ;;  %v702_v37 = vrot.slane %v2428_v60, 1 }
  0x52   : > { %v697_v8 = vsel %vm658_vm0, %v695_v3, %v696_v5  ;;  %v509_v3 = vshll.u32 %v2910_v58, 16 }
  0x53   : > { %963 = vrot.lane.b32.xlu1 %v694_v41, %s2602_s4 }
  0x54   : > { %947 = vrot.lane.b32.xlu0 %v670_v42, %s2602_s4  ;;  %v511_v16 = vrot.slane %v509_v3, 1  ;;  %v2966_v3 = vld [vmem:[%s2647_s19 + $0xb4] sm:$0xff]  }
  0x57   : > { %648 = vrot.lane.b32.xlu1 %v577_v31, %s2597_s22 }
  0x58   : > { %632 = vrot.lane.b32.xlu0 %v481_v32, %s2597_s22 }
  0x5b   : > { %727 = vrot.lane.b32.xlu1 %v2746_v11, %s2596_s21  ;;  %v673_v11 = vsel %vm658_vm0, %v671_v6, %v672_v7  ;;  %v603_v6 = vshrl.u32 %v2904_v56, 16  ;;  %v607_v7 = vrot.slane %v605_v61, 1 }
  0x5c   : > { %711 = vrot.lane.b32.xlu0 %v667_v14, %s2596_s21  ;;  %v2843_v14 = vld [vmem:[%s2647_s19 + $0x3c] sm:$0xff]  }
  0x5d   : > { %v497_v18 = vshll.u32 %v2843_v14, 16  ;;  %v495_v22 = vshrl.u32 %v2843_v14, 16  ;;  %v674_v40 = vrot.slane %v2843_v14, 1  ;;  %v608_v19 = vor.u32 %v607_v7, %v603_v6 }
  0x5f   : > { %729 = vrot.lane.b32.xlu1 %v694_v41, %s2596_s21  ;;  %v499_v24 = vrot.slane %v497_v18, 1 }
  0x60   : > { %713 = vrot.lane.b32.xlu0 %v670_v42, %s2596_s21 }
  0x61   : > { %v500_v28 = vor.u32 %v499_v24, %v495_v22  ;;  %v512_v22 = vor.u32 %v511_v16, %v507_v15 }
  0x63   : > { %764 = vrot.lane.b32.xlu1 %v2741_v10, %s2595_s20  ;;  %v505_v33 = vsel %vm433_vm1, %v500_v28, %v504_v29 }
  0x64   : > { %748 = vrot.lane.b32.xlu0 %v2750_v13, %s2595_s20 }
  0x67   : > { %766 = vrot.lane.b32.xlu1 %v2805_v43, %s2595_s20 }
  0x68   : > { %750 = vrot.lane.b32.xlu0 %v2809_v44, %s2595_s20 }
  0x6b   : > { %811 = vrot.lane.b32.xlu1 %v577_v31, %s2598_s23  ;;  %v601_v31 = vsel %vm433_vm1, %v596_v26, %v600_v27 }
  0x6c   : > { %795 = vrot.lane.b32.xlu0 %v481_v32, %s2598_s23 }
  0x6f   : > { %813 = vrot.lane.b32.xlu1 %v589_v62, %s2598_s23 }
  0x70   : > { %797 = vrot.lane.b32.xlu0 %v493_v63, %s2598_s23 }
  0x73   : > { %846 = vrot.lane.b32.xlu1 %v694_v41, %s2599_s24  ;;  %v675_v41 = vrot.slane %v2425_v17, 1 }
  0x74   : > { %830 = vrot.lane.b32.xlu0 %v670_v42, %s2599_s24 }
  0x75   : > { %v2889_v49 = vsel %vm658_vm0, %v674_v40, %v675_v41 }
  0x77   : > { %848 = vrot.lane.b32.xlu1 %v697_v8, %s2599_s24 }
  0x78   : > { %832 = vrot.lane.b32.xlu0 %v673_v11, %s2599_s24 }
  0x7b   : > { %883 = vrot.lane.b32.xlu1 %v2805_v43, %s2600_s25 }
  0x7c   : > { %867 = vrot.lane.b32.xlu0 %v2809_v44, %s2600_s25 }
  0x7f   : > { %885 = vrot.lane.b32.xlu1 %v2838_v9, %s2600_s25 }
  0x80   : > { %869 = vrot.lane.b32.xlu0 %v2843_v14, %s2600_s25 }
  0x83   : > { %930 = vrot.lane.b32.xlu1 %v589_v62, %s2601_s26 }
  0x84   : > { %914 = vrot.lane.b32.xlu0 %v493_v63, %s2601_s26 }
  0x85   : > { %v2862_v30 = vpop.permute.xlu1 %760 }
  0x86   : > { %v2866_v32 = vpop.permute.xlu0 %744 }
  0x87   : > { %932 = vrot.lane.b32.xlu1 %v601_v31, %s2601_s26 }
  0x88   : > { %916 = vrot.lane.b32.xlu0 %v505_v33, %s2601_s26 }
  0x89   : > { %v2871_v34 = vpop.permute.xlu1 %723 }
  0x8a   : > { %v2873_v35 = vpop.permute.xlu0 %707 }
  0x8b   : > { %965 = vrot.lane.b32.xlu1 %v697_v8, %s2602_s4 }
  0x8c   : > { %949 = vrot.lane.b32.xlu0 %v673_v11, %s2602_s4 }
  0x8d   : > { %v2878_v38 = vpop.permute.xlu1 %725 }
  0x8e   : > { %v2881_v42 = vpop.permute.xlu0 %709 }
  0x8f   : > { %650 = vrot.lane.b32.xlu1 %v589_v62, %s2597_s22 }
  0x90   : > { %634 = vrot.lane.b32.xlu0 %v493_v63, %s2597_s22  ;;  %v2429_v63 = vld [vmem:[%s2647_s19 + $0x50] ss:$0 sps:$4 sm:$0x11]  }
  0x91   : > { %v2886_v47 = vpop.permute.xlu1 %628  ;;  %v514_v17 = vshll.u32 %v2429_v63, 16  ;;  %v678_v40 = vrot.slane %v2429_v63, 1 }
  0x92   : > { %v627_v50 = vpop.permute.xlu0 %626 }
  0x93   : > { %967 = vrot.lane.b32.xlu1 %v700_v45, %s2602_s4  ;;  %v516_v24 = vrot.slane %v514_v17, 1  ;;  %v979_v6 = vsel %vm977_vm3, %v2664_v4, %v627_v50 }
  0x94   : > { %951 = vrot.lane.b32.xlu0 %v2889_v49, %s2602_s4  ;;  %v1012_v4 = vsel %vm1010_vm4, %v979_v6, %v2873_v35  ;;  %v2995_v35 = vld [vmem:[%s2647_s19 + $0x5c] ss:$0 sps:$4 sm:$0x11]  }
  0x95   : > { %v2894_v52 = vpop.permute.xlu1 %644  ;;  %v2947_v28 = vsel %vm433_vm1, %v512_v22, %v516_v24  ;;  %v615_v22 = vshrl.u32 %v2966_v3, 16 }
  0x96   : > { %v643_v53 = vpop.permute.xlu0 %642 }
  0x97   : > { %652 = vrot.lane.b32.xlu1 %v601_v31, %s2597_s22  ;;  %v995_v41 = vsel %vm977_vm3, %v2660_v2, %v643_v53 }
  0x98   : > { %636 = vrot.lane.b32.xlu0 %v505_v33, %s2597_s22  ;;  %v1028_v53 = vsel %vm1010_vm4, %v995_v41, %v2871_v34  ;;  %v617_v34 = vshll.u32 %v2966_v3, 16 }
  0x99   : > { %v2898_v54 = vpop.permute.xlu1 %762  ;;  %v1061_v50 = vsel %vm1043_vm6, %v1028_v53, %v2862_v30  ;;  %v526_v53 = vshll.u32 %v2995_v35, 16 }
  0x9a   : > { %v2900_v55 = vpop.permute.xlu0 %746 }
  0x9b   : > { %731 = vrot.lane.b32.xlu1 %v697_v8, %s2596_s21  ;;  %v610_v8 = vshll.u32 %v2428_v60, 16  ;;  %v2963_v60 = vsel %vm658_vm0, %v701_v36, %v702_v37  ;;  %v619_v36 = vrot.slane %v617_v34, 1 }
  0x9c   : > { %715 = vrot.lane.b32.xlu0 %v673_v11, %s2596_s21 }
  0x9d   : > { %v2907_v57 = vpop.permute.xlu1 %807  ;;  %v612_v20 = vrot.slane %v610_v8, 1 }
  0x9e   : > { %v2912_v59 = vpop.permute.xlu0 %791  ;;  %v1094_v16 = vsel %vm1076_vm5, %v1061_v50, %v2907_v57 }
  0x9f   : > { %733 = vrot.lane.b32.xlu1 %v700_v45, %s2596_s21  ;;  %v2943_v26 = vsel %vm433_vm1, %v608_v19, %v612_v20  ;;  %v1045_v19 = vsel %vm1043_vm6, %v1012_v4, %v2866_v32  ;;  %v997_v32 = vsel %vm977_vm3, %v2650_v0, %v2894_v52  ;;  %v981_v0 = vsel %vm977_vm3, %v2653_v1, %v2886_v47 }
  0xa0   : > { %717 = vrot.lane.b32.xlu0 %v2889_v49, %s2596_s21  ;;  %v1078_v57 = vsel %vm1076_vm5, %v1045_v19, %v2912_v59  ;;  %v620_v4 = vor.u32 %v619_v36, %v615_v22  ;;  %v1014_v47 = vsel %vm1010_vm4, %v981_v0, %v2881_v42 }
  0xa1   : > { %v2919_v62 = vpop.permute.xlu1 %809 }
  0xa2   : > { %v2923_v5 = vpop.permute.xlu0 %793 }
  0xa3   : > { %768 = vrot.lane.b32.xlu1 %v2838_v9, %s2595_s20 }
  0xa4   : > { %752 = vrot.lane.b32.xlu0 %v2843_v14, %s2595_s20 }
  0xa5   : > { %v843_v11 = vpop.permute.xlu1 %842 }
  0xa6   : > { %v2931_v18 = vpop.permute.xlu0 %826  ;;  %v1127_v20 = vsel %vm1109_vm7, %v1094_v16, %v843_v11  ;;  %v528_v16 = vrot.slane %v526_v53, 1 }
  0xa7   : > { %770 = vrot.lane.b32.xlu1 %v2904_v56, %s2595_s20  ;;  %v1111_v11 = vsel %vm1109_vm7, %v1078_v57, %v2931_v18 }
  0xa8   : > { %754 = vrot.lane.b32.xlu0 %v2910_v58, %s2595_s20 }
  0xa9   : > { %v2937_v21 = vpop.permute.xlu1 %844 }
  0xaa   : > { %v2939_v25 = vpop.permute.xlu0 %828 }
  0xab   : > { %815 = vrot.lane.b32.xlu1 %v601_v31, %s2598_s23 }
  0xac   : > { %799 = vrot.lane.b32.xlu0 %v505_v33, %s2598_s23  ;;  %v677_v33 = vrot.slane %v2910_v58, 1 }
  0xad   : > { %v880_v27 = vpop.permute.xlu1 %879 }
  0xae   : > { %v864_v29 = vpop.permute.xlu0 %863  ;;  %v2975_v7 = vsel %vm658_vm0, %v677_v33, %v678_v40  ;;  %v1160_v24 = vsel %vm1142_vm8, %v1127_v20, %v880_v27 }
  0xaf   : > { %817 = vrot.lane.b32.xlu1 %v2943_v26, %s2598_s23  ;;  %v1144_v27 = vsel %vm1142_vm8, %v1111_v11, %v864_v29  ;;  %v1030_v29 = vsel %vm1010_vm4, %v997_v32, %v2878_v38  ;;  %v704_v32 = vrot.slane %v2966_v3, 1 }
  0xb0   : > { %801 = vrot.lane.b32.xlu0 %v2947_v28, %s2598_s23  ;;  %v1063_v50 = vsel %vm1043_vm6, %v1030_v29, %v2898_v54  ;;  %v2437_v29 = vld [vmem:[%s2647_s19 + $0xc0] sm:$0xff]  }
  0xb1   : > { %v2954_v31 = vpop.permute.xlu1 %881  ;;  %v1096_v38 = vsel %vm1076_vm5, %v1063_v50, %v2919_v62  ;;  %v782_v50 = vshll.u32 %v2437_v29, 16 }
  0xb2   : > { %v2959_v61 = vpop.permute.xlu0 %865  ;;  %v1129_v54 = vsel %vm1109_vm7, %v1096_v38, %v2937_v21 }
  0xb3   : > { %850 = vrot.lane.b32.xlu1 %v700_v45, %s2599_s24  ;;  %v2978_v45 = vld [vmem:[%s2647_s19 + $0x54] sm:$0xff]   ;;  %v1162_v42 = vsel %vm1142_vm8, %v1129_v54, %v2954_v31 }
  0xb4   : > { %834 = vrot.lane.b32.xlu0 %v2889_v49, %s2599_s24  ;;  %v2985_v49 = vld [vmem:[%s2647_s19 + $0xbc] ss:$0 sps:$4 sm:$0x11]   ;;  %v521_v17 = vshll.u32 %v2978_v45, 16  ;;  %v519_v59 = vshrl.u32 %v2978_v45, 16 }
  0xb5   : > { %v927_v63 = vpop.permute.xlu1 %926  ;;  %v622_v37 = vshll.u32 %v2985_v49, 16  ;;  %v705_v11 = vrot.slane %v2985_v49, 1 }
  0xb6   : > { %v911_v8 = vpop.permute.xlu0 %910  ;;  %v1193_v33 = vsel %vm1175_vm9, %v1160_v24, %v927_v63  ;;  %v523_v6 = vrot.slane %v521_v17, 1  ;;  %v1047_v17 = vsel %vm1043_vm6, %v1014_v47, %v2900_v55 }
  0xb7   : > { %852 = vrot.lane.b32.xlu1 %v2963_v60, %s2599_s24  ;;  %v1177_v52 = vsel %vm1175_vm9, %v1144_v27, %v911_v8  ;;  %v624_v34 = vrot.slane %v622_v37, 1  ;;  %v1080_v20 = vsel %vm1076_vm5, %v1047_v17, %v2923_v5  ;;  %v681_v27 = vrot.slane %v2995_v35, 1 }
  0xb8   : > { %836 = vrot.lane.b32.xlu0 %v2975_v7, %s2599_s24  ;;  %v524_v8 = vor.u32 %v523_v6, %v519_v59  ;;  %v1113_v55 = vsel %vm1109_vm7, %v1080_v20, %v2939_v25  ;;  %v680_v59 = vrot.slane %v2978_v45, 1  ;;  %v706_v49 = vsel %vm658_vm0, %v704_v32, %v705_v11  ;;  %v3167_v11 = vld [vmem:[%s2647_s19 + $0xd4] ss:$0 sps:$4 sm:$0x11]  }
  0xb9   : > { %v929_v15 = vpop.permute.xlu1 %928  ;;  %v3054_v62 = vsel %vm433_vm1, %v620_v4, %v624_v34  ;;  %v1146_v57 = vsel %vm1142_vm8, %v1113_v55, %v2959_v61  ;;  %v2438_v34 = vld [vmem:[%s2647_s19 + $0xc8] ss:$0 sps:$4 sm:$0x11]  }
  0xba   : > { %v913_v30 = vpop.permute.xlu0 %912  ;;  %v1195_v22 = vsel %vm1175_vm9, %v1162_v42, %v929_v15  ;;  %v3065_v24 = vsel %vm433_vm1, %v524_v8, %v528_v16  ;;  %v682_v35 = vsel %vm658_vm0, %v680_v59, %v681_v27  ;;  %v784_v8 = vrot.slane %v782_v50, 1 }
  0xbb   : > { %887 = vrot.lane.b32.xlu1 %v2904_v56, %s2600_s25  ;;  %v1179_v36 = vsel %vm1175_vm9, %v1146_v57, %v913_v30  ;;  %v787_v16 = vshll.u32 %v2438_v34, 16  ;;  %v906_v50 = vshll.u32 %v3167_v11, 16 }
  0xbc   : > { %871 = vrot.lane.b32.xlu0 %v2910_v58, %s2600_s25 }
  0xbd   : > { %v962_v40 = vpop.permute.xlu1 %961  ;;  %v789_v20 = vrot.slane %v787_v16, 1 }
  0xbe   : > { %v1234_v41 = vsel %vm1208_vm10, %v1193_v33, %v962_v40  ;;  %v946_v18 = vpop.permute.xlu0 %945 }
  0xbf   : > { %1266 = vst.msk [vmem:[#allocation2 + $0x40] sm:$0xff] %vm1257_vm11, %v1234_v41  ;;  %889 = vrot.lane.b32.xlu1 %v2966_v3, %s2600_s25  ;;  %v1210_v63 = vsel %vm1208_vm10, %v1177_v52, %v946_v18 }
  0xc0   : > { %1258 = vst.msk [vmem:[#allocation2] sm:$0xff] %vm1257_vm11, %v1210_v63  ;;  %873 = vrot.lane.b32.xlu0 %v2978_v45, %s2600_s25 }
  0xc1   : > { %v3035_v1 = vpop.permute.xlu1 %646 }
  0xc2   : > { %v3045_v19 = vpop.permute.xlu0 %630 }
  0xc3   : > { %934 = vrot.lane.b32.xlu1 %v2943_v26, %s2601_s26  ;;  %v983_v59 = vsel %vm977_vm3, %v2701_v46, %v3045_v19 }
  0xc4   : > { %918 = vrot.lane.b32.xlu0 %v2947_v28, %s2601_s26 }
  0xc5   : > { %v964_v21 = vpop.permute.xlu1 %963 }
  0xc6   : > { %v1237_v5 = vsel %vm1208_vm10, %v1195_v22, %v964_v21  ;;  %v1282_v31 = vld [vmem:[#allocation2 + $0x40] sm:$0xff]  ;;  %v948_v25 = vpop.permute.xlu0 %947 }
  0xc7   : > { %1267 = vst.msk [vmem:[#allocation2 + $0x48] sm:$0xff] %vm1257_vm11, %v1237_v5  ;;  %936 = vrot.lane.b32.xlu1 %v3054_v62, %s2601_s26  ;;  %2345 = vmatprep.mubr.msk.bf16.mxu1 %vm1257_vm11, %v1282_v31  ;;  %v1213_v15 = vsel %vm1208_vm10, %v1179_v36, %v948_v25  ;;  %v1274_v37 = vld [vmem:[#allocation2] sm:$0xff]  ;;  %v824_v5 = vrot.slane %v2438_v34, 1 }
  0xc8   : > { %1259 = vst.msk [vmem:[#allocation2 + $0x8] sm:$0xff] %vm1257_vm11, %v1213_v15  ;;  %920 = vrot.lane.b32.xlu0 %v3065_v24, %s2601_s26  ;;  %2329 = vmatprep.mubr.msk.bf16.mxu0 %vm1257_vm11, %v1274_v37  ;;  %v999_v15 = vsel %vm977_vm3, %v2695_v39, %v3035_v1 }
  0xc9   : > { %v3077_v61 = vpop.permute.xlu1 %648 }
  0xca   : > { %v3079_v30 = vpop.permute.xlu0 %632 }
  0xcb   : > { %969 = vrot.lane.b32.xlu1 %v2963_v60, %s2602_s4 }
  0xcc   : > { %953 = vrot.lane.b32.xlu0 %v2975_v7, %s2602_s4 }
  0xcd   : > { %v3087_v33 = vpop.permute.xlu1 %727 }
  0xce   : > { %v1283_v40 = vld [vmem:[#allocation2 + $0x48] sm:$0xff]  ;;  %v3091_v41 = vpop.permute.xlu0 %711  ;;  %v1032_v32 = vsel %vm1010_vm4, %v999_v15, %v3087_v33 }
  0xcf   : > { %654 = vrot.lane.b32.xlu1 %v2943_v26, %s2597_s22  ;;  %2346 = vmatmul.mubr.msk.bf16.vlgmr.msra.gmra.mrb[0].mxu1 %vm1257_vm11, %v1283_v40  ;;  %v1275_v6 = vld [vmem:[#allocation2 + $0x8] sm:$0xff]  ;;  %v1016_v1 = vsel %vm1010_vm4, %v983_v59, %v3091_v41  ;;  %v943_v59 = vrot.slane %v3167_v11, 1 }
  0xd0   : > { %638 = vrot.lane.b32.xlu0 %v2947_v28, %s2597_s22  ;;  %2330 = vmatmul.mubr.msk.bf16.vlgmr.msra.gmra.mrb[0].mxu0 %vm1257_vm11, %v1275_v6 }
  0xd1   : > { %v3100_v53 = vpop.permute.xlu1 %729 }
  0xd2   : > { %v3103_v0 = vpop.permute.xlu0 %713 }
  0xd3   : > { %971 = vrot.lane.b32.xlu1 %v706_v49, %s2602_s4 }
  0xd4   : > { %955 = vrot.lane.b32.xlu0 %v682_v35, %s2602_s4 }
  0xd5   : > { %v765_v26 = vpop.permute.xlu1 %764 }
  0xd6   : > { %v749_v52 = vpop.permute.xlu0 %748  ;;  %v1065_v27 = vsel %vm1043_vm6, %v1032_v32, %v765_v26 }
  0xd7   : > { %656 = vrot.lane.b32.xlu1 %v3054_v62, %s2597_s22  ;;  %v1049_v6 = vsel %vm1043_vm6, %v1016_v1, %v749_v52 }
  0xd8   : > { %640 = vrot.lane.b32.xlu0 %v3065_v24, %s2597_s22 }
  0xd9   : > { %v3111_v28 = vpop.permute.xlu1 %766 }
  0xda   : > { %v3113_v18 = vpop.permute.xlu0 %750 }
  0xdb   : > { %735 = vrot.lane.b32.xlu1 %v2963_v60, %s2596_s21  ;;  %v780_v60 = vshrl.u32 %v2437_v29, 16 }
  0xdc   : > { %719 = vrot.lane.b32.xlu0 %v2975_v7, %s2596_s21 }
  0xdd   : > { %v812_v63 = vpop.permute.xlu1 %811  ;;  %v785_v54 = vor.u32 %v784_v8, %v780_v60  ;;  %v2569_v60 = vld [vmem:[%s2647_s19 + $0x60] sm:$0xff]  }
  0xde   : > { %v796_v4 = vpop.permute.xlu0 %795  ;;  %v1098_v33 = vsel %vm1076_vm5, %v1065_v27, %v812_v63 }
  0xdf   : > { %737 = vrot.lane.b32.xlu1 %v706_v49, %s2596_s21  ;;  %v3141_v22 = vsel %vm433_vm1, %v785_v54, %v789_v20  ;;  %v1082_v19 = vsel %vm1076_vm5, %v1049_v6, %v796_v4  ;;  %v1001_v4 = vsel %vm977_vm3, %v2741_v10, %v3077_v61  ;;  %v2570_v61 = vld [vmem:[%s2647_s19 + $0x6c] sm:$0xff]  }
  0xe0   : > { %721 = vrot.lane.b32.xlu0 %v682_v35, %s2596_s21 }
  0xe1   : > { %v3123_v47 = vpop.permute.xlu1 %813 }
  0xe2   : > { %v3125_v38 = vpop.permute.xlu0 %797 }
  0xe3   : > { %772 = vrot.lane.b32.xlu1 %v2966_v3, %s2595_s20 }
  0xe4   : > { %756 = vrot.lane.b32.xlu0 %v2978_v45, %s2595_s20 }
  0xe5   : > { %v847_v7 = vpop.permute.xlu1 %846 }
  0xe6   : > { %v831_v17 = vpop.permute.xlu0 %830 }
  0xe7   : > { %774 = vrot.lane.b32.xlu1 %v2437_v29, %s2595_s20  ;;  %v1115_v41 = vsel %vm1109_vm7, %v1082_v19, %v831_v17  ;;  %v1034_v17 = vsel %vm1010_vm4, %v1001_v4, %v3100_v53 }
  0xe8   : > { %758 = vrot.lane.b32.xlu0 %v2660_v2, %s2595_s20  ;;  %v823_v2 = vrot.slane %v2437_v29, 1  ;;  %v1067_v10 = vsel %vm1043_vm6, %v1034_v17, %v3111_v28 }
  0xe9   : > { %v3134_v42 = vpop.permute.xlu1 %848 }
  0xea   : > { %v3136_v55 = vpop.permute.xlu0 %832 }
  0xeb   : > { %819 = vrot.lane.b32.xlu1 %v3054_v62, %s2598_s23  ;;  %v3153_v62 = vsel %vm658_vm0, %v823_v2, %v824_v5  ;;  %v1100_v5 = vsel %vm1076_vm5, %v1067_v10, %v3123_v47 }
  0xec   : > { %803 = vrot.lane.b32.xlu0 %v3065_v24, %s2598_s23  ;;  %v3156_v24 = vld [vmem:[%s2647_s19 + $0xcc] sm:$0xff]  }
  0xed   : > { %v884_v21 = vpop.permute.xlu1 %883  ;;  %v901_v40 = vshll.u32 %v3156_v24, 16  ;;  %v899_v46 = vshrl.u32 %v3156_v24, 16 }
  0xee   : > { %v868_v57 = vpop.permute.xlu0 %867 }
  0xef   : > { %821 = vrot.lane.b32.xlu1 %v3141_v22, %s2598_s23  ;;  %v903_v34 = vrot.slane %v901_v40, 1 }
  0xf0   : > { %805 = vrot.lane.b32.xlu0 %v2711_v51, %s2598_s23 }
  0xf1   : > { %v886_v31 = vpop.permute.xlu1 %885  ;;  %v904_v20 = vor.u32 %v903_v34, %v899_v46 }
  0xf2   : > { %v3149_v36 = vpop.permute.xlu0 %869 }
  0xf3   : > { %854 = vrot.lane.b32.xlu1 %v706_v49, %s2599_s24  ;;  %v1131_v49 = vsel %vm1109_vm7, %v1098_v33, %v847_v7 }
  0xf4   : > { %838 = vrot.lane.b32.xlu0 %v682_v35, %s2599_s24  ;;  %v1164_v26 = vsel %vm1142_vm8, %v1131_v49, %v884_v21  ;;  %v908_v21 = vrot.slane %v906_v50, 1 }
  0xf5   : > { %v931_v25 = vpop.permute.xlu1 %930 }
  0xf6   : > { %v915_v37 = vpop.permute.xlu0 %914  ;;  %v1197_v63 = vsel %vm1175_vm9, %v1164_v26, %v931_v25 }
  0xf7   : > { %856 = vrot.lane.b32.xlu1 %v3153_v62, %s2599_s24 }
  0xf8   : > { %840 = vrot.lane.b32.xlu0 %v2673_v12, %s2599_s24 }
  0xf9   : > { %v933_v39 = vpop.permute.xlu1 %932 }
  0xfa   : > { %v917_v35 = vpop.permute.xlu0 %916 }
  0xfb   : > { %891 = vrot.lane.b32.xlu1 %v2437_v29, %s2600_s25  ;;  %v1148_v29 = vsel %vm1142_vm8, %v1115_v41, %v868_v57  ;;  %v985_v57 = vsel %vm977_vm3, %v2750_v13, %v3079_v30  ;;  %v1133_v13 = vsel %vm1109_vm7, %v1100_v5, %v3134_v42 }
  0xfc   : > { %875 = vrot.lane.b32.xlu0 %v2569_v60, %s2600_s25  ;;  %v1181_v16 = vsel %vm1175_vm9, %v1148_v29, %v915_v37  ;;  %v1018_v53 = vsel %vm1010_vm4, %v985_v57, %v3103_v0  ;;  %v1166_v15 = vsel %vm1142_vm8, %v1133_v13, %v886_v31  ;;  %v909_v0 = vsel %vm433_vm1, %v904_v20, %v908_v21 }
  0xfd   : > { %v966_v52 = vpop.permute.xlu1 %965  ;;  %v1051_v25 = vsel %vm1043_vm6, %v1018_v53, %v3113_v18  ;;  %v1199_v37 = vsel %vm1175_vm9, %v1166_v15, %v933_v39 }
  0xfe   : > { %v1240_v8 = vsel %vm1208_vm10, %v1197_v63, %v966_v52  ;;  %v950_v7 = vpop.permute.xlu0 %949  ;;  %v1084_v28 = vsel %vm1076_vm5, %v1051_v25, %v3125_v38 }
  0xff   : > { %1268 = vst.msk [vmem:[#allocation2 + $0x50] sm:$0xff] %vm1257_vm11, %v1240_v8  ;;  %893 = vrot.lane.b32.xlu1 %v3156_v24, %s2600_s25  ;;  %v1216_v54 = vsel %vm1208_vm10, %v1181_v16, %v950_v7  ;;  %v1117_v47 = vsel %vm1109_vm7, %v1084_v28, %v3136_v55 }
 0x100   : > { %1260 = vst.msk [vmem:[#allocation2 + $0x10] sm:$0xff] %vm1257_vm11, %v1216_v54  ;;  %877 = vrot.lane.b32.xlu0 %v2570_v61, %s2600_s25  ;;  %v1150_v42 = vsel %vm1142_vm8, %v1117_v47, %v3149_v36 }
 0x101   : > { %v651_v2 = vpop.permute.xlu1 %650  ;;  %v1183_v38 = vsel %vm1175_vm9, %v1150_v42, %v917_v35 }
 0x102   : > { %v635_v30 = vpop.permute.xlu0 %634  ;;  %v1003_v16 = vsel %vm977_vm3, %v2805_v43, %v651_v2 }
 0x103   : > { %938 = vrot.lane.b32.xlu1 %v3141_v22, %s2601_s26  ;;  %v987_v54 = vsel %vm977_vm3, %v2809_v44, %v635_v30 }
 0x104   : > { %922 = vrot.lane.b32.xlu0 %v2711_v51, %s2601_s26  ;;  %v942_v51 = vrot.slane %v3156_v24, 1 }
 0x105   : > { %v968_v18 = vpop.permute.xlu1 %967 }
 0x106   : > { %v1243_v22 = vsel %vm1208_vm10, %v1199_v37, %v968_v18  ;;  %v1284_v32 = vld [vmem:[#allocation2 + $0x50] sm:$0xff]  ;;  %v952_v31 = vpop.permute.xlu0 %951  ;;  %v944_v39 = vsel %vm658_vm0, %v942_v51, %v943_v59 }
 0x107   : > { %1269 = vst.msk [vmem:[#allocation2 + $0x58] sm:$0xff] %vm1257_vm11, %v1243_v22  ;;  %940 = vrot.lane.b32.xlu1 %v909_v0, %s2601_s26  ;;  %2349 = vmatprep.mubr.msk.bf16.mxu1 %vm1257_vm11, %v1284_v32  ;;  %v1219_v55 = vsel %vm1208_vm10, %v1183_v38, %v952_v31  ;;  %v1276_v40 = vld [vmem:[#allocation2 + $0x10] sm:$0xff] }
 0x108   : > { %1261 = vst.msk [vmem:[#allocation2 + $0x18] sm:$0xff] %vm1257_vm11, %v1219_v55  ;;  %924 = vrot.lane.b32.xlu0 %v2706_v48, %s2601_s26  ;;  %2333 = vmatprep.mubr.msk.bf16.mxu0 %vm1257_vm11, %v1276_v40 }
 0x109   : > { %v653_v36 = vpop.permute.xlu1 %652 }
 0x10a   : > { %v637_v27 = vpop.permute.xlu0 %636  ;;  %v1005_v15 = vsel %vm977_vm3, %v2838_v9, %v653_v36 }
 0x10b   : > { %973 = vrot.lane.b32.xlu1 %v3153_v62, %s2602_s4  ;;  %v989_v42 = vsel %vm977_vm3, %v2843_v14, %v637_v27 }
 0x10c   : > { %957 = vrot.lane.b32.xlu0 %v2673_v12, %s2602_s4 }
 0x10d   : > { %v732_v24 = vpop.permute.xlu1 %731 }
 0x10e   : > { %v1285_v1 = vld [vmem:[#allocation2 + $0x58] sm:$0xff]  ;;  %v716_v11 = vpop.permute.xlu0 %715  ;;  %v1036_v17 = vsel %vm1010_vm4, %v1003_v16, %v732_v24 }
 0x10f   : > { %975 = vrot.lane.b32.xlu1 %v944_v39, %s2602_s4  ;;  %2350 = vmatmul.mubr.msk.bf16.gmra.mrb[4].mxu1 %vm1257_vm11, %v1285_v1  ;;  %v1277_v48 = vld [vmem:[#allocation2 + $0x18] sm:$0xff]  ;;  %v1020_v57 = vsel %vm1010_vm4, %v987_v54, %v716_v11 }
 0x110   : > { %959 = vrot.lane.b32.xlu0 %v2685_v23, %s2602_s4  ;;  %2334 = vmatmul.mubr.msk.bf16.gmra.mrb[4].mxu0 %vm1257_vm11, %v1277_v48 }
 0x111   : > { %v734_v33 = vpop.permute.xlu1 %733 }
 0x112   : > { %v718_v62 = vpop.permute.xlu0 %717  ;;  %v1038_v37 = vsel %vm1010_vm4, %v1005_v15, %v734_v33 }
 0x113   : > { %v1022_v38 = vsel %vm1010_vm4, %v989_v42, %v718_v62 }
 0x115   : > { %v769_v6 = vpop.permute.xlu1 %768 }
 0x116   : > { %v753_v49 = vpop.permute.xlu0 %752  ;;  %v1069_v20 = vsel %vm1043_vm6, %v1036_v17, %v769_v6 }
 0x117   : > { %v1053_v61 = vsel %vm1043_vm6, %v1020_v57, %v753_v49 }
 0x119   : > { %v771_v35 = vpop.permute.xlu1 %770 }
 0x11a   : > { %v755_v46 = vpop.permute.xlu0 %754  ;;  %v1071_v22 = vsel %vm1043_vm6, %v1038_v37, %v771_v35 }
 0x11b   : > { %v1055_v31 = vsel %vm1043_vm6, %v1022_v38, %v755_v46 }
 0x11d   : > { %v816_v12 = vpop.permute.xlu1 %815 }
 0x11e   : > { %v800_v19 = vpop.permute.xlu0 %799  ;;  %v1102_v10 = vsel %vm1076_vm5, %v1069_v20, %v816_v12 }
 0x11f   : > { %v1086_v43 = vsel %vm1076_vm5, %v1053_v61, %v800_v19 }
 0x121   : > { %v818_v26 = vpop.permute.xlu1 %817 }
 0x122   : > { %v802_v34 = vpop.permute.xlu0 %801  ;;  %v1104_v9 = vsel %vm1076_vm5, %v1071_v22, %v818_v26 }
 0x123   : > { %v1088_v51 = vsel %vm1076_vm5, %v1055_v31, %v802_v34 }
 0x125   : > { %v851_v50 = vpop.permute.xlu1 %850 }
 0x126   : > { %v835_v41 = vpop.permute.xlu0 %834  ;;  %v1135_v53 = vsel %vm1109_vm7, %v1102_v10, %v851_v50 }
 0x127   : > { %v1119_v25 = vsel %vm1109_vm7, %v1086_v43, %v835_v41 }
 0x129   : > { %v853_v63 = vpop.permute.xlu1 %852 }
 0x12a   : > { %v837_v60 = vpop.permute.xlu0 %836  ;;  %v1137_v55 = vsel %vm1109_vm7, %v1104_v9, %v853_v63 }
 0x12b   : > { %v1121_v14 = vsel %vm1109_vm7, %v1088_v51, %v837_v60 }
 0x12d   : > { %v888_v52 = vpop.permute.xlu1 %887 }
 0x12e   : > { %v872_v29 = vpop.permute.xlu0 %871  ;;  %v1168_v2 = vsel %vm1142_vm8, %v1135_v53, %v888_v52 }
 0x12f   : > { %v1152_v30 = vsel %vm1142_vm8, %v1119_v25, %v872_v29 }
 0x131   : > { %v890_v8 = vpop.permute.xlu1 %889 }
 0x132   : > { %v874_v23 = vpop.permute.xlu0 %873  ;;  %v1170_v59 = vsel %vm1142_vm8, %v1137_v55, %v890_v8 }
 0x133   : > { %v1154_v39 = vsel %vm1142_vm8, %v1121_v14, %v874_v23 }
 0x135   : > { %v935_v4 = vpop.permute.xlu1 %934 }
 0x136   : > { %v919_v7 = vpop.permute.xlu0 %918  ;;  %v1201_v44 = vsel %vm1175_vm9, %v1168_v2, %v935_v4 }
 0x137   : > { %v1185_v0 = vsel %vm1175_vm9, %v1152_v30, %v919_v7 }
 0x139   : > { %v937_v21 = vpop.permute.xlu1 %936 }
 0x13a   : > { %v921_v5 = vpop.permute.xlu0 %920  ;;  %v1203_v36 = vsel %vm1175_vm9, %v1170_v59, %v937_v21 }
 0x13b   : > { %v1187_v11 = vsel %vm1175_vm9, %v1154_v39, %v921_v5 }
 0x13d   : > { %v970_v13 = vpop.permute.xlu1 %969 }
 0x13e   : > { %v1246_v28 = vsel %vm1208_vm10, %v1201_v44, %v970_v13  ;;  %v954_v47 = vpop.permute.xlu0 %953 }
 0x13f   : > { %1270 = vst.msk [vmem:[#allocation2 + $0x60] sm:$0xff] %vm1257_vm11, %v1246_v28  ;;  %v1222_v18 = vsel %vm1208_vm10, %v1185_v0, %v954_v47 }
 0x140   : > { %1262 = vst.msk [vmem:[#allocation2 + $0x20] sm:$0xff] %vm1257_vm11, %v1222_v18 }
 0x141   : > { %v655_v32 = vpop.permute.xlu1 %654 }
 0x142   : > { %v639_v40 = vpop.permute.xlu0 %638  ;;  %v1007_v61 = vsel %vm977_vm3, %v2904_v56, %v655_v32 }
 0x143   : > { %v991_v43 = vsel %vm977_vm3, %v2910_v58, %v639_v40 }
 0x145   : > { %v972_v27 = vpop.permute.xlu1 %971 }
 0x146   : > { %v1249_v24 = vsel %vm1208_vm10, %v1203_v36, %v972_v27  ;;  %v1286_v1 = vld [vmem:[#allocation2 + $0x60] sm:$0xff]  ;;  %v956_v48 = vpop.permute.xlu0 %955 }
 0x147   : > { %1271 = vst.msk [vmem:[#allocation2 + $0x68] sm:$0xff] %vm1257_vm11, %v1249_v24  ;;  %2353 = vmatprep.mubr.msk.bf16.mxu1 %vm1257_vm11, %v1286_v1  ;;  %v1225_v33 = vsel %vm1208_vm10, %v1187_v11, %v956_v48  ;;  %v1278_v62 = vld [vmem:[#allocation2 + $0x20] sm:$0xff] }
 0x148   : > { %1263 = vst.msk [vmem:[#allocation2 + $0x28] sm:$0xff] %vm1257_vm11, %v1225_v33  ;;  %2337 = vmatprep.mubr.msk.bf16.mxu0 %vm1257_vm11, %v1278_v62 }
 0x149   : > { %v657_v6 = vpop.permute.xlu1 %656 }
 0x14a   : > { %v641_v49 = vpop.permute.xlu0 %640  ;;  %v1009_v30 = vsel %vm977_vm3, %v2966_v3, %v657_v6 }
 0x14b   : > { %v993_v37 = vsel %vm977_vm3, %v2978_v45, %v641_v49 }
 0x14d   : > { %v736_v35 = vpop.permute.xlu1 %735 }
 0x14e   : > { %v1287_v46 = vld [vmem:[#allocation2 + $0x68] sm:$0xff]  ;;  %v720_v12 = vpop.permute.xlu0 %719  ;;  %v1040_v5 = vsel %vm1010_vm4, %v1007_v61, %v736_v35 }
 0x14f   : > { %2354 = vmatmul.mubr.msk.bf16.gmra.mrb[8].mxu1 %vm1257_vm11, %v1287_v46  ;;  %v1279_v19 = vld [vmem:[#allocation2 + $0x28] sm:$0xff]  ;;  %v1024_v44 = vsel %vm1010_vm4, %v991_v43, %v720_v12  ;;  %v3344_v12 = vld [vmem:[%s3443_s2] ss:$0 sm:$0xff] }
 0x150   : > { %2338 = vmatmul.mubr.msk.bf16.gmra.mrb[8].mxu0 %vm1257_vm11, %v1279_v19 }
 0x151   : > { %v738_v26 = vpop.permute.xlu1 %737 }
 0x152   : > { %v722_v34 = vpop.permute.xlu0 %721  ;;  %v1042_v0 = vsel %vm1010_vm4, %v1009_v30, %v738_v26 }
 0x153   : > { %v1026_v32 = vsel %vm1010_vm4, %v993_v37, %v722_v34 }
 0x155   : > { %v773_v50 = vpop.permute.xlu1 %772 }
 0x156   : > { %v757_v41 = vpop.permute.xlu0 %756  ;;  %v1073_v2 = vsel %vm1043_vm6, %v1040_v5, %v773_v50 }
 0x157   : > { %v1057_v28 = vsel %vm1043_vm6, %v1024_v44, %v757_v41 }
 0x159   : > { %v775_v63 = vpop.permute.xlu1 %774 }
 0x15a   : > { %v759_v60 = vpop.permute.xlu0 %758  ;;  %v1075_v18 = vsel %vm1043_vm6, %v1042_v0, %v775_v63 }
 0x15b   : > { %v1059_v55 = vsel %vm1043_vm6, %v1026_v32, %v759_v60 }
 0x15d   : > { %v820_v52 = vpop.permute.xlu1 %819 }
 0x15e   : > { %v804_v29 = vpop.permute.xlu0 %803  ;;  %v1106_v13 = vsel %vm1076_vm5, %v1073_v2, %v820_v52 }
 0x15f   : > { %v1090_v47 = vsel %vm1076_vm5, %v1057_v28, %v804_v29 }
 0x161   : > { %v822_v8 = vpop.permute.xlu1 %821 }
 0x162   : > { %v806_v23 = vpop.permute.xlu0 %805  ;;  %v1108_v38 = vsel %vm1076_vm5, %v1075_v18, %v822_v8 }
 0x163   : > { %v1092_v59 = vsel %vm1076_vm5, %v1059_v55, %v806_v23 }
 0x165   : > { %v855_v4 = vpop.permute.xlu1 %854 }
 0x166   : > { %v839_v16 = vpop.permute.xlu0 %838  ;;  %v1139_v56 = vsel %vm1109_vm7, %v1106_v13, %v855_v4 }
 0x167   : > { %v1123_v42 = vsel %vm1109_vm7, %v1090_v47, %v839_v16 }
 0x169   : > { %v857_v7 = vpop.permute.xlu1 %856 }
 0x16a   : > { %v841_v17 = vpop.permute.xlu0 %840  ;;  %v1141_v40 = vsel %vm1109_vm7, %v1108_v38, %v857_v7 }
 0x16b   : > { %v1125_v27 = vsel %vm1109_vm7, %v1092_v59, %v841_v17 }
 0x16d   : > { %v892_v54 = vpop.permute.xlu1 %891 }
 0x16e   : > { %v876_v20 = vpop.permute.xlu0 %875  ;;  %v1172_v58 = vsel %vm1142_vm8, %v1139_v56, %v892_v54 }
 0x16f   : > { %v1156_v9 = vsel %vm1142_vm8, %v1123_v42, %v876_v20 }
 0x171   : > { %v894_v21 = vpop.permute.xlu1 %893 }
 0x172   : > { %v878_v57 = vpop.permute.xlu0 %877  ;;  %v1174_v14 = vsel %vm1142_vm8, %v1141_v40, %v894_v21 }
 0x173   : > { %v1158_v1 = vsel %vm1142_vm8, %v1125_v27, %v878_v57 }
 0x175   : > { %v939_v10 = vpop.permute.xlu1 %938 }
 0x176   : > { %v923_v53 = vpop.permute.xlu0 %922  ;;  %v1205_v3 = vsel %vm1175_vm9, %v1172_v58, %v939_v10 }
 0x177   : > { %v1189_v45 = vsel %vm1175_vm9, %v1156_v9, %v923_v53 }
 0x179   : > { %v941_v25 = vpop.permute.xlu1 %940 }
 0x17a   : > { %v925_v15 = vpop.permute.xlu0 %924  ;;  %v1207_v39 = vsel %vm1175_vm9, %v1174_v14, %v941_v25 }
 0x17b   : > { %v1191_v48 = vsel %vm1175_vm9, %v1158_v1, %v925_v15 }
 0x17d   : > { %v974_v22 = vpop.permute.xlu1 %973 }
 0x17e   : > { %v1252_v31 = vsel %vm1208_vm10, %v1205_v3, %v974_v22  ;;  %v958_v51 = vpop.permute.xlu0 %957 }
 0x17f   : > { %1272 = vst.msk [vmem:[#allocation2 + $0x70] sm:$0xff] %vm1257_vm11, %v1252_v31  ;;  %v1228_v36 = vsel %vm1208_vm10, %v1189_v45, %v958_v51 }
 0x180   : > { %1264 = vst.msk [vmem:[#allocation2 + $0x30] sm:$0xff] %vm1257_vm11, %v1228_v36 }
 0x181   : > { %v976_v24 = vpop.permute.xlu1 %975 }
 0x182   : > { %v1255_v11 = vsel %vm1208_vm10, %v1207_v39, %v976_v24  ;;  %v960_v33 = vpop.permute.xlu0 %959 }
 0x183   : > { %1273 = vst.msk [vmem:[#allocation2 + $0x78] sm:$0xff] %vm1257_vm11, %v1255_v11  ;;  %v1231_v62 = vsel %vm1208_vm10, %v1191_v48, %v960_v33 }
 0x184   : > { %1265 = vst.msk [vmem:[#allocation2 + $0x38] sm:$0xff] %vm1257_vm11, %v1231_v62 }
 0x186   : > { %v1288_v6 = vld [vmem:[#allocation2 + $0x70] sm:$0xff] }
 0x187   : > { %2357 = vmatprep.mubr.msk.bf16.mxu1 %vm1257_vm11, %v1288_v6  ;;  %v1280_v49 = vld [vmem:[#allocation2 + $0x30] sm:$0xff] }
 0x188   : > { %2341 = vmatprep.mubr.msk.bf16.mxu0 %vm1257_vm11, %v1280_v49 }
 0x18a   : > { %v1289_v35 = vld [vmem:[#allocation2 + $0x78] sm:$0xff] }
 0x18b   : > { %2358 = vmatmul.mubr.msk.bf16.gmra.mrb[12].mxu1 %vm1257_vm11, %v1289_v35  ;;  %v1281_v46 = vld [vmem:[#allocation2 + $0x38] sm:$0xff] }
 0x18c   : > { %2342 = vmatmul.mubr.msk.bf16.gmra.mrb[12].mxu0 %vm1257_vm11, %v1281_v46 }
 0x1a2   : > { %v2347_v19 = vpop.f32.mrb[0].mxu1 }
 0x1a3   : > { %v3347_v26 = vadd.f32 %v2347_v19, %v3344_v12  ;;  %v1468_v34 = vpop.f32.mrb[1].mxu1  ;;  %v2331_v50 = vpop.f32.mrb[0].mxu0 }
 0x1a4   : > { %v3350_v41 = vadd.f32 %v3344_v12, %v1468_v34  ;;  %v2348_v63 = vpop.f32.mrb[2].mxu1  ;;  %v1413_v60 = vadd.f32 %v2331_v50, %v3344_v12  ;;  %v1404_v29 = vpop.f32.mrb[1].mxu0 }
 0x1a5   : > { %v2128_v52 = vmul.f32 -1.442695, %v3347_v26  ;;  %v1480_v8 = vadd.f32 %v2348_v63, %v3344_v12  ;;  %v1471_v23 = vpop.f32.mrb[3].mxu1  ;;  %v1405_v4 = vadd.f32 %v3344_v12, %v1404_v29  ;;  %v2332_v7 = vpop.f32.mrb[2].mxu0 }
 0x1a6   : > { %v2126_v16 = vmul.f32 -1.442695, %v3350_v41  ;;  %v1472_v17 = vadd.f32 %v3344_v12, %v1471_v23  ;;  %v2112_v54 = vmul.f32 -1.442695, %v1413_v60  ;;  %v1416_v20 = vadd.f32 %v2332_v7, %v3344_v12  ;;  %v1407_v21 = vpop.f32.mrb[3].mxu0 }
 0x1a7   : > { %2441 = vpow2.f32 %v2128_v52  ;;  %v2110_v57 = vmul.f32 -1.442695, %v1405_v4  ;;  %v2129_v10 = vmul.f32 -1.442695, %v1480_v8  ;;  %v1408_v61 = vadd.f32 %v3344_v12, %v1407_v21 }
 0x1a8   : > { %2443 = vpow2.f32 %v2126_v16  ;;  %v2113_v53 = vmul.f32 -1.442695, %v1416_v20  ;;  %v2127_v43 = vmul.f32 -1.442695, %v1472_v17 }
 0x1a9   : > { %2445 = vpow2.f32 %v2112_v54  ;;  %v2111_v5 = vmul.f32 -1.442695, %v1408_v61 }
 0x1aa   : > { %2447 = vpow2.f32 %v2110_v57 }
 0x1ab   : > { %2449 = vpow2.f32 %v2113_v53 }
 0x1ac   : > { %2451 = vpow2.f32 %v2129_v10 }
 0x1ad   : > { %2453 = vpow2.f32 %v2111_v5 }
 0x1ae   : > { %2455 = vpow2.f32 %v2127_v43 }
 0x1b1   : > { %v2442_v2 = vpop.eup %2441 }
 0x1b2   : > { %v2444_v25 = vpop.eup %2443  ;;  %v1645_v44 = vadd.f32 1.0, %v2442_v2 }
 0x1b3   : > { %v2446_v13 = vpop.eup %2445  ;;  %v1643_v30 = vadd.f32 1.0, %v2444_v25 }
 0x1b4   : > { %v2448_v28 = vpop.eup %2447  ;;  %v1629_v56 = vadd.f32 1.0, %v2446_v13  ;;  %2457 = vrcp.f32 %v1645_v44 }
 0x1b5   : > { %v2450_v15 = vpop.eup %2449  ;;  %v1627_v0 = vadd.f32 1.0, %v2448_v28  ;;  %2459 = vrcp.f32 %v1643_v30 }
 0x1b6   : > { %v2452_v47 = vpop.eup %2451  ;;  %2461 = vrcp.f32 %v1629_v56  ;;  %v1630_v58 = vadd.f32 1.0, %v2450_v15 }
 0x1b7   : > { %v2454_v37 = vpop.eup %2453  ;;  %2463 = vrcp.f32 %v1627_v0  ;;  %v1646_v18 = vadd.f32 1.0, %v2452_v47 }
 0x1b8   : > { %v2456_v42 = vpop.eup %2455  ;;  %2465 = vrcp.f32 %v1630_v58  ;;  %v1628_v3 = vadd.f32 1.0, %v2454_v37 }
 0x1b9   : > { %2467 = vrcp.f32 %v1646_v18  ;;  %v1644_v22 = vadd.f32 1.0, %v2456_v42 }
 0x1ba   : > { %2469 = vrcp.f32 %v1628_v3 }
 0x1bb   : > { %2471 = vrcp.f32 %v1644_v22 }
 0x1be   : > { %v2458_v32 = vpop.eup %2457 }
 0x1bf   : > { %v2460_v38 = vpop.eup %2459  ;;  %v1741_v14 = vmul.f32 %v2458_v32, %v3347_v26 }
 0x1c0   : > { %v2462_v9 = vpop.eup %2461  ;;  %v1739_v11 = vmul.f32 %v2460_v38, %v3350_v41 }
 0x1c1   : > { %v2464_v31 = vpop.eup %2463  ;;  %v1725_v45 = vmul.f32 %v2462_v9, %v1413_v60 }
 0x1c2   : > { %v2466_v55 = vpop.eup %2465  ;;  %v1723_v39 = vmul.f32 %v2464_v31, %v1405_v4 }
 0x1c3   : > { %v2468_v40 = vpop.eup %2467  ;;  %v1726_v51 = vmul.f32 %v2466_v55, %v1416_v20 }
 0x1c4   : > { %v2470_v59 = vpop.eup %2469  ;;  %v1742_v36 = vmul.f32 %v2468_v40, %v1480_v8 }
 0x1c5   : > { %v2472_v27 = vpop.eup %2471  ;;  %v2217_v24 = vpack.c.bf16 %v1726_v51, %v1725_v45  ;;  %v1724_v1 = vmul.f32 %v2470_v59, %v1408_v61 }
 0x1c6   : > { %v2257_v48 = vpack.c.bf16 %v1742_v36, %v1741_v14  ;;  %v1740_v33 = vmul.f32 %v2472_v27, %v1472_v17 }
 0x1c7   : > { %2289 = vst [vmem:[%s3365_s16 + $0x8] sm:$0xff] %v2217_v24   ;;  %v2212_v62 = vpack.c.bf16 %v1724_v1, %v1723_v39 }
 0x1c8   : > { %2297 = vst [vmem:[%s3365_s16 + $0x48] sm:$0xff] %v2257_v48   ;;  %v2252_v6 = vpack.c.bf16 %v1740_v33, %v1739_v11 }
 0x1c9   : > { %2213 = vst [vmem:[%s3365_s16] sm:$0xff] %v2212_v62  }
 0x1ca   : > { %2296 = vst [vmem:[%s3365_s16 + $0x40] sm:$0xff] %v2252_v6  }
 0x1e2   : > { %v2351_v49 = vpop.f32.mrb[4].mxu1 }
 0x1e3   : > { %v3373_v35 = vadd.f32 %v2351_v49, %v3344_v12  ;;  %v1484_v46 = vpop.f32.mrb[5].mxu1  ;;  %v2335_v19 = vpop.f32.mrb[4].mxu0 }
 0x1e4   : > { %v3376_v26 = vadd.f32 %v3344_v12, %v1484_v46  ;;  %v2352_v34 = vpop.f32.mrb[6].mxu1  ;;  %v1429_v50 = vadd.f32 %v2335_v19, %v3344_v12  ;;  %v1420_v63 = vpop.f32.mrb[5].mxu0 }
 0x1e5   : > { %v2132_v41 = vmul.f32 -1.442695, %v3373_v35  ;;  %v1496_v60 = vadd.f32 %v2352_v34, %v3344_v12  ;;  %v1487_v52 = vpop.f32.mrb[7].mxu1  ;;  %v1421_v29 = vadd.f32 %v3344_v12, %v1420_v63  ;;  %v2336_v23 = vpop.f32.mrb[6].mxu0 }
 0x1e6   : > { %v2130_v8 = vmul.f32 -1.442695, %v3376_v26  ;;  %v1488_v4 = vadd.f32 %v3344_v12, %v1487_v52  ;;  %v2116_v16 = vmul.f32 -1.442695, %v1429_v50  ;;  %v1432_v7 = vadd.f32 %v2336_v23, %v3344_v12  ;;  %v1423_v17 = vpop.f32.mrb[7].mxu0 }
 0x1e7   : > { %2473 = vpow2.f32 %v2132_v41  ;;  %v2114_v54 = vmul.f32 -1.442695, %v1421_v29  ;;  %v2133_v20 = vmul.f32 -1.442695, %v1496_v60  ;;  %v1424_v21 = vadd.f32 %v3344_v12, %v1423_v17 }
 0x1e8   : > { %2475 = vpow2.f32 %v2130_v8  ;;  %v2117_v57 = vmul.f32 -1.442695, %v1432_v7  ;;  %v2131_v61 = vmul.f32 -1.442695, %v1488_v4 }
 0x1e9   : > { %2477 = vpow2.f32 %v2116_v16  ;;  %v2115_v10 = vmul.f32 -1.442695, %v1424_v21 }
 0x1ea   : > { %2479 = vpow2.f32 %v2114_v54 }
 0x1eb   : > { %2481 = vpow2.f32 %v2117_v57 }
 0x1ec   : > { %2483 = vpow2.f32 %v2133_v20 }
 0x1ed   : > { %2485 = vpow2.f32 %v2115_v10 }
 0x1ee   : > { %2487 = vpow2.f32 %v2131_v61 }
 0x1f1   : > { %v2474_v53 = vpop.eup %2473 }
 0x1f2   : > { %v2476_v5 = vpop.eup %2475  ;;  %v1649_v43 = vadd.f32 1.0, %v2474_v53 }
 0x1f3   : > { %v2478_v2 = vpop.eup %2477  ;;  %v1647_v25 = vadd.f32 1.0, %v2476_v5 }
 0x1f4   : > { %v2480_v44 = vpop.eup %2479  ;;  %v1633_v13 = vadd.f32 1.0, %v2478_v2  ;;  %2489 = vrcp.f32 %v1649_v43 }
 0x1f5   : > { %v2482_v30 = vpop.eup %2481  ;;  %v1631_v28 = vadd.f32 1.0, %v2480_v44  ;;  %2491 = vrcp.f32 %v1647_v25 }
 0x1f6   : > { %v2484_v56 = vpop.eup %2483  ;;  %2493 = vrcp.f32 %v1633_v13  ;;  %v1634_v15 = vadd.f32 1.0, %v2482_v30 }
 0x1f7   : > { %v2486_v0 = vpop.eup %2485  ;;  %2495 = vrcp.f32 %v1631_v28  ;;  %v1650_v47 = vadd.f32 1.0, %v2484_v56 }
 0x1f8   : > { %v2488_v58 = vpop.eup %2487  ;;  %2497 = vrcp.f32 %v1634_v15  ;;  %v1632_v37 = vadd.f32 1.0, %v2486_v0 }
 0x1f9   : > { %2499 = vrcp.f32 %v1650_v47  ;;  %v1648_v18 = vadd.f32 1.0, %v2488_v58 }
 0x1fa   : > { %2501 = vrcp.f32 %v1632_v37 }
 0x1fb   : > { %2503 = vrcp.f32 %v1648_v18 }
 0x1fe   : > { %v2490_v42 = vpop.eup %2489 }
 0x1ff   : > { %v2492_v3 = vpop.eup %2491  ;;  %v1745_v45 = vmul.f32 %v2490_v42, %v3373_v35 }
 0x200   : > { %v2494_v22 = vpop.eup %2493  ;;  %v1743_v39 = vmul.f32 %v2492_v3, %v3376_v26 }
 0x201   : > { %v2496_v32 = vpop.eup %2495  ;;  %v1729_v31 = vmul.f32 %v2494_v22, %v1429_v50 }
 0x202   : > { %v2498_v38 = vpop.eup %2497  ;;  %v1727_v14 = vmul.f32 %v2496_v32, %v1421_v29 }
 0x203   : > { %v2500_v9 = vpop.eup %2499  ;;  %v1730_v55 = vmul.f32 %v2498_v38, %v1432_v7 }
 0x204   : > { %v2502_v40 = vpop.eup %2501  ;;  %v1746_v51 = vmul.f32 %v2500_v9, %v1496_v60 }
 0x205   : > { %v2504_v59 = vpop.eup %2503  ;;  %v2227_v36 = vpack.c.bf16 %v1730_v55, %v1729_v31  ;;  %v1728_v27 = vmul.f32 %v2502_v40, %v1424_v21 }
 0x206   : > { %v2267_v24 = vpack.c.bf16 %v1746_v51, %v1745_v45  ;;  %v1744_v1 = vmul.f32 %v2504_v59, %v1488_v4 }
 0x207   : > { %2291 = vst [vmem:[%s3365_s16 + $0x18] sm:$0xff] %v2227_v36   ;;  %v2222_v11 = vpack.c.bf16 %v1728_v27, %v1727_v14 }
 0x208   : > { %2299 = vst [vmem:[%s3365_s16 + $0x58] sm:$0xff] %v2267_v24   ;;  %v2262_v48 = vpack.c.bf16 %v1744_v1, %v1743_v39 }
 0x209   : > { %2290 = vst [vmem:[%s3365_s16 + $0x10] sm:$0xff] %v2222_v11  }
 0x20a   : > { %2298 = vst [vmem:[%s3365_s16 + $0x50] sm:$0xff] %v2262_v48  }
 0x222   : > { %v2355_v33 = vpop.f32.mrb[8].mxu1 }
 0x223   : > { %v3393_v62 = vadd.f32 %v2355_v33, %v3344_v12  ;;  %v1500_v6 = vpop.f32.mrb[9].mxu1  ;;  %v2339_v49 = vpop.f32.mrb[8].mxu0 }
 0x224   : > { %v3396_v35 = vadd.f32 %v3344_v12, %v1500_v6  ;;  %v2356_v46 = vpop.f32.mrb[10].mxu1  ;;  %v1445_v19 = vadd.f32 %v2339_v49, %v3344_v12  ;;  %v1436_v34 = vpop.f32.mrb[9].mxu0 }
 0x225   : > { %v2136_v26 = vmul.f32 -1.442695, %v3393_v62  ;;  %v1512_v50 = vadd.f32 %v2356_v46, %v3344_v12  ;;  %v1503_v41 = vpop.f32.mrb[11].mxu1  ;;  %v1437_v63 = vadd.f32 %v3344_v12, %v1436_v34  ;;  %v2340_v52 = vpop.f32.mrb[10].mxu0 }
 0x226   : > { %v2134_v60 = vmul.f32 -1.442695, %v3396_v35  ;;  %v1504_v29 = vadd.f32 %v3344_v12, %v1503_v41  ;;  %v2120_v8 = vmul.f32 -1.442695, %v1445_v19  ;;  %v1448_v23 = vadd.f32 %v2340_v52, %v3344_v12  ;;  %v1439_v4 = vpop.f32.mrb[11].mxu0 }
 0x227   : > { %2505 = vpow2.f32 %v2136_v26  ;;  %v2118_v16 = vmul.f32 -1.442695, %v1437_v63  ;;  %v2137_v7 = vmul.f32 -1.442695, %v1512_v50  ;;  %v1440_v17 = vadd.f32 %v3344_v12, %v1439_v4 }
 0x228   : > { %2507 = vpow2.f32 %v2134_v60  ;;  %v2121_v54 = vmul.f32 -1.442695, %v1448_v23  ;;  %v2135_v21 = vmul.f32 -1.442695, %v1504_v29 }
 0x229   : > { %2509 = vpow2.f32 %v2120_v8  ;;  %v2119_v20 = vmul.f32 -1.442695, %v1440_v17 }
 0x22a   : > { %2511 = vpow2.f32 %v2118_v16 }
 0x22b   : > { %2513 = vpow2.f32 %v2121_v54 }
 0x22c   : > { %2515 = vpow2.f32 %v2137_v7 }
 0x22d   : > { %2517 = vpow2.f32 %v2119_v20 }
 0x22e   : > { %2519 = vpow2.f32 %v2135_v21 }
 0x231   : > { %v2506_v57 = vpop.eup %2505 }
 0x232   : > { %v2508_v10 = vpop.eup %2507  ;;  %v1653_v61 = vadd.f32 1.0, %v2506_v57 }
 0x233   : > { %v2510_v53 = vpop.eup %2509  ;;  %v1651_v5 = vadd.f32 1.0, %v2508_v10 }
 0x234   : > { %v2512_v43 = vpop.eup %2511  ;;  %v1637_v2 = vadd.f32 1.0, %v2510_v53  ;;  %2521 = vrcp.f32 %v1653_v61 }
 0x235   : > { %v2514_v25 = vpop.eup %2513  ;;  %v1635_v44 = vadd.f32 1.0, %v2512_v43  ;;  %2523 = vrcp.f32 %v1651_v5 }
 0x236   : > { %v2516_v13 = vpop.eup %2515  ;;  %2525 = vrcp.f32 %v1637_v2  ;;  %v1638_v30 = vadd.f32 1.0, %v2514_v25 }
 0x237   : > { %v2518_v28 = vpop.eup %2517  ;;  %2527 = vrcp.f32 %v1635_v44  ;;  %v1654_v56 = vadd.f32 1.0, %v2516_v13 }
 0x238   : > { %v2520_v15 = vpop.eup %2519  ;;  %2529 = vrcp.f32 %v1638_v30  ;;  %v1636_v0 = vadd.f32 1.0, %v2518_v28 }
 0x239   : > { %2531 = vrcp.f32 %v1654_v56  ;;  %v1652_v47 = vadd.f32 1.0, %v2520_v15 }
 0x23a   : > { %2533 = vrcp.f32 %v1636_v0 }
 0x23b   : > { %2535 = vrcp.f32 %v1652_v47 }
 0x23e   : > { %v2522_v58 = vpop.eup %2521 }
 0x23f   : > { %v2524_v37 = vpop.eup %2523  ;;  %v1749_v31 = vmul.f32 %v2522_v58, %v3393_v62 }
 0x240   : > { %v2526_v18 = vpop.eup %2525  ;;  %v1747_v14 = vmul.f32 %v2524_v37, %v3396_v35 }
 0x241   : > { %v2528_v42 = vpop.eup %2527  ;;  %v1733_v32 = vmul.f32 %v2526_v18, %v1445_v19 }
 0x242   : > { %v2530_v3 = vpop.eup %2529  ;;  %v1731_v45 = vmul.f32 %v2528_v42, %v1437_v63 }
 0x243   : > { %v2532_v22 = vpop.eup %2531  ;;  %v1734_v38 = vmul.f32 %v2530_v3, %v1448_v23 }
 0x244   : > { %v2534_v9 = vpop.eup %2533  ;;  %v1750_v55 = vmul.f32 %v2532_v22, %v1512_v50 }
 0x245   : > { %v2536_v40 = vpop.eup %2535  ;;  %v2237_v51 = vpack.c.bf16 %v1734_v38, %v1733_v32  ;;  %v1732_v59 = vmul.f32 %v2534_v9, %v1440_v17 }
 0x246   : > { %v2277_v36 = vpack.c.bf16 %v1750_v55, %v1749_v31  ;;  %v1748_v27 = vmul.f32 %v2536_v40, %v1504_v29 }
 0x247   : > { %2293 = vst [vmem:[%s3365_s16 + $0x28] sm:$0xff] %v2237_v51   ;;  %v2232_v39 = vpack.c.bf16 %v1732_v59, %v1731_v45 }
 0x248   : > { %2301 = vst [vmem:[%s3365_s16 + $0x68] sm:$0xff] %v2277_v36   ;;  %v2272_v24 = vpack.c.bf16 %v1748_v27, %v1747_v14 }
 0x249   : > { %2292 = vst [vmem:[%s3365_s16 + $0x20] sm:$0xff] %v2232_v39  }
 0x24a   : > { %2300 = vst [vmem:[%s3365_s16 + $0x60] sm:$0xff] %v2272_v24  }
 0x25e   : > { %v2359_v1 = vpop.f32.mrb[12].mxu1 }
 0x25f   : > { %v3413_v11 = vadd.f32 %v2359_v1, %v3344_v12  ;;  %v1516_v48 = vpop.f32.mrb[13].mxu1  ;;  %v2343_v33 = vpop.f32.mrb[12].mxu0 }
 0x260   : > { %v3416_v62 = vadd.f32 %v3344_v12, %v1516_v48  ;;  %v2360_v6 = vpop.f32.mrb[14].mxu1  ;;  %v1461_v49 = vadd.f32 %v2343_v33, %v3344_v12  ;;  %v1452_v46 = vpop.f32.mrb[13].mxu0 }
 0x261   : > { %v2140_v35 = vmul.f32 -1.442695, %v3413_v11  ;;  %v1528_v19 = vadd.f32 %v2360_v6, %v3344_v12  ;;  %v1519_v26 = vpop.f32.mrb[15].mxu1  ;;  %v1453_v34 = vadd.f32 %v3344_v12, %v1452_v46  ;;  %v2344_v41 = vpop.f32.mrb[14].mxu0 }
 0x262   : > { %v2138_v50 = vmul.f32 -1.442695, %v3416_v62  ;;  %v1520_v63 = vadd.f32 %v3344_v12, %v1519_v26  ;;  %v2124_v60 = vmul.f32 -1.442695, %v1461_v49  ;;  %v1464_v52 = vadd.f32 %v2344_v41, %v3344_v12  ;;  %v1455_v29 = vpop.f32.mrb[15].mxu0 }
 0x263   : > { %2537 = vpow2.f32 %v2140_v35  ;;  %v2122_v8 = vmul.f32 -1.442695, %v1453_v34  ;;  %v2141_v23 = vmul.f32 -1.442695, %v1528_v19  ;;  %v1456_v4 = vadd.f32 %v3344_v12, %v1455_v29 }
 0x264   : > { %2539 = vpow2.f32 %v2138_v50  ;;  %v2125_v16 = vmul.f32 -1.442695, %v1464_v52  ;;  %v2139_v17 = vmul.f32 -1.442695, %v1520_v63 }
 0x265   : > { %2541 = vpow2.f32 %v2124_v60  ;;  %v2123_v7 = vmul.f32 -1.442695, %v1456_v4 }
 0x266   : > { %2543 = vpow2.f32 %v2122_v8 }
 0x267   : > { %2545 = vpow2.f32 %v2125_v16 }
 0x268   : > { %2547 = vpow2.f32 %v2141_v23 }
 0x269   : > { %2549 = vpow2.f32 %v2123_v7 }
 0x26a   : > { %2551 = vpow2.f32 %v2139_v17 }
 0x26d   : > { %v2538_v54 = vpop.eup %2537 }
 0x26e   : > { %v2540_v20 = vpop.eup %2539  ;;  %v1657_v21 = vadd.f32 1.0, %v2538_v54 }
 0x26f   : > { %v2542_v57 = vpop.eup %2541  ;;  %v1655_v10 = vadd.f32 1.0, %v2540_v20 }
 0x270   : > { %v2544_v61 = vpop.eup %2543  ;;  %v1641_v53 = vadd.f32 1.0, %v2542_v57  ;;  %2553 = vrcp.f32 %v1657_v21 }
 0x271   : > { %v2546_v5 = vpop.eup %2545  ;;  %v1639_v43 = vadd.f32 1.0, %v2544_v61  ;;  %2555 = vrcp.f32 %v1655_v10 }
 0x272   : > { %v2548_v12 = vpop.eup %2547  ;;  %2557 = vrcp.f32 %v1641_v53  ;;  %v1642_v2 = vadd.f32 1.0, %v2546_v5 }
 0x273   : > { %v2550_v25 = vpop.eup %2549  ;;  %2559 = vrcp.f32 %v1639_v43  ;;  %v1658_v44 = vadd.f32 1.0, %v2548_v12 }
 0x274   : > { %v2552_v13 = vpop.eup %2551  ;;  %2561 = vrcp.f32 %v1642_v2  ;;  %v1640_v30 = vadd.f32 1.0, %v2550_v25 }
 0x275   : > { %2563 = vrcp.f32 %v1658_v44  ;;  %v1656_v28 = vadd.f32 1.0, %v2552_v13 }
 0x276   : > { %2565 = vrcp.f32 %v1640_v30 }
 0x277   : > { %2567 = vrcp.f32 %v1656_v28 }
 0x27a   : > { %v2554_v56 = vpop.eup %2553 }
 0x27b   : > { %v2556_v15 = vpop.eup %2555  ;;  %v1753_v22 = vmul.f32 %v2554_v56, %v3413_v11 }
 0x27c   : > { %v2558_v0 = vpop.eup %2557  ;;  %v1751_v40 = vmul.f32 %v2556_v15, %v3416_v62 }
 0x27d   : > { %v2560_v47 = vpop.eup %2559  ;;  %v1737_v18 = vmul.f32 %v2558_v0, %v1461_v49 }
 0x27e   : > { %v2562_v58 = vpop.eup %2561  ;;  %v1735_v9 = vmul.f32 %v2560_v47, %v1453_v34 }
 0x27f   : > { %v2564_v37 = vpop.eup %2563  ;;  %v1738_v42 = vmul.f32 %v2562_v58, %v1464_v52 }
 0x280   : > { %v2566_v3 = vpop.eup %2565  ;;  %v1754_v32 = vmul.f32 %v2564_v37, %v1528_v19 }
 0x281   : > { %v2568_v38 = vpop.eup %2567  ;;  %v2247_v31 = vpack.c.bf16 %v1738_v42, %v1737_v18  ;;  %v1736_v55 = vmul.f32 %v2566_v3, %v1456_v4 }
 0x282   : > { %v2287_v45 = vpack.c.bf16 %v1754_v32, %v1753_v22  ;;  %v1752_v51 = vmul.f32 %v2568_v38, %v1520_v63 }
 0x283   : > { %2295 = vst [vmem:[%s3365_s16 + $0x38] sm:$0xff] %v2247_v31   ;;  %v2242_v59 = vpack.c.bf16 %v1736_v55, %v1735_v9 }
 0x284   : > { %2303 = vst [vmem:[%s3365_s16 + $0x78] sm:$0xff] %v2287_v45   ;;  %v2282_v14 = vpack.c.bf16 %v1752_v51, %v1751_v40 }
 0x285   : > { %2294 = vst [vmem:[%s3365_s16 + $0x30] sm:$0xff] %v2242_v59  }
 0x286   : > { %2302 = vst [vmem:[%s3365_s16 + $0x70] sm:$0xff] %v2282_v14  }
 0x287 PF: > { %s13_s14 = sadd.s32 1, %s2593_s14   ;;  %s3445_s12 = smov %s2589_s13 }
 0x288   : > { %p10_p5 = scmp.ge.s32.totalorder %s13_s14, 4   ;;  %s3446_s13 = smov %s3448_s15 }
 0x28a   :  { %12 = sbr.rel (!%p10_p5) target bundleno = 2 (0x2), region = 73 }

</bundles_post_ra>
